<compile_context>
chip_gen: v7x
topology: tpu7x:2x2x1
jax: 0.10.0
libtpu: 0.0.40
codegen_flags: <defaults>
</compile_context>

<pallas_src>
import functools

import jax
import jax.numpy as jnp
from jax import lax
from jax.experimental import pallas as pl
from jax.experimental.pallas import tpu as pltpu


def _round_up(x, m):
    return ((x + m - 1) // m) * m


def _pick_tm(m):
    """Largest row tile that still leaves >= 4 grid steps (>=2 per v7x TC)."""
    for tm in (1024, 512, 256):
        if m >= 4 * tm:
            return tm
    return 128


def _basis_parts(x, zcenters, inv_h):
    """Yield base (SiLU) and RBF basis tiles as bf16, in packed-weight order."""
    yield (x * jax.nn.sigmoid(x)).astype(jnp.bfloat16)   # SiLU; padded cols stay 0
    z = x * inv_h                                        # hoisted once per tile
    for zc in zcenters:                                  # static unroll over grid
        yield jnp.exp(-jnp.square(z - zc)).astype(jnp.bfloat16)


def _ckan_kernel_fused(x_ref, w_ref, o_ref, a_ref, *, zcenters, inv_h, kpad,
                       bf16_eup):
    """Stage all bases into a VMEM slab, then one fused bf16 MXU dot (v5e/v6e)."""
    x = x_ref[...]                                       # (tm, KPAD) bf16
    if not bf16_eup:
        x = x.astype(jnp.float32)                        # v5e: f32 EUP path
    for g, part in enumerate(_basis_parts(x, zcenters, inv_h)):
        a_ref[:, g * kpad:(g + 1) * kpad] = part         # 128-lane aligned store
    # Rows of w matching padded / unused columns are zero, so padding never
    # leaks into the result.
    o_ref[...] = jnp.dot(a_ref[...], w_ref[...],
                         preferred_element_type=jnp.float32).astype(o_ref.dtype)


def _ckan_kernel_acc(x_ref, w_ref, o_ref, *, zcenters, inv_h, kpad, bf16_eup):
    """Per-basis dot + accumulate (v7x: MRB accumulates in place, no A slab)."""
    x = x_ref[...]
    if not bf16_eup:
        x = x.astype(jnp.float32)
    acc = None
    for g, part in enumerate(_basis_parts(x, zcenters, inv_h)):
        d = jnp.dot(part, w_ref[g * kpad:(g + 1) * kpad, :],
                    preferred_element_type=jnp.float32)
        acc = d if acc is None else acc + d
    o_ref[...] = acc.astype(o_ref.dtype)


def ckan_conv_pallas(x_nchw, w_packed, *, zcenters, inv_h, kdim, kpad,
                     grid_size, bf16_eup, per_basis_acc, tm=None):
    """Fused CKAN 3x3 VALID conv producing the concatenated policy+value slab.

    x_nchw:   (N, C_in, H, W) float32
    w_packed: ((G+1)*KPAD, COUT_PAD) bfloat16 (row blocks: base, spline_0..G-1)
    returns:  (N, H-2, W-2, COUT_PAD) bf16 NHWC slab (caller slices channels).
    """
    n, _, h, w = x_nchw.shape
    ho, wo = h - 2, w - 2
    cout_pad = w_packed.shape[1]
    kp1 = w_packed.shape[0]                  # (G+1) * KPAD

    # im2col (XLA glue): (N, C*9, Ho, Wo) -> (M, K) -> pad -> bf16.
    patches = lax.conv_general_dilated_patches(
        x_nchw, filter_shape=(3, 3), window_strides=(1, 1), padding="VALID")
    p = jnp.transpose(patches, (0, 2, 3, 1)).reshape(n * ho * wo, kdim)
    m = p.shape[0]

    if tm is None:
        tm = _pick_tm(m)
    steps = pl.cdiv(m, tm)
    steps += steps % 2                       # even step count: balanced v7x TCs
    m_pad = steps * tm
    p = jnp.pad(p, ((0, m_pad - m), (0, kpad - kdim))).astype(jnp.bfloat16)

    if per_basis_acc:
        kernel = functools.partial(_ckan_kernel_acc, zcenters=zcenters,
                                   inv_h=inv_h, kpad=kpad, bf16_eup=bf16_eup)
        scratch = []
    else:
        kernel = functools.partial(_ckan_kernel_fused, zcenters=zcenters,
                                   inv_h=inv_h, kpad=kpad, bf16_eup=bf16_eup)
        scratch = [pltpu.VMEM((tm, kp1), jnp.bfloat16)]   # A staging slab

    out = pl.pallas_call(
        kernel,
        out_shape=jax.ShapeDtypeStruct((m_pad, cout_pad), jnp.bfloat16),
        grid_spec=pltpu.PrefetchScalarGridSpec(
            num_scalar_prefetch=0,
            grid=(m_pad // tm,),
            in_specs=[
                pl.BlockSpec((tm, kpad), lambda i: (i, 0)),       # patch rows
                pl.BlockSpec((kp1, cout_pad), lambda i: (0, 0)),  # resident weights
            ],
            out_specs=pl.BlockSpec((tm, cout_pad), lambda i: (i, 0)),
            scratch_shapes=scratch),
        compiler_params=pltpu.CompilerParams(
            dimension_semantics=("parallel",)),
    )(p, w_packed)

    return out[:m].reshape(n, ho, wo, cout_pad)          # NHWC bf16 slab


def _kan_head_forward(features, w_packed, *, zcenters, inv_h, kdim, kpad,
                      grid_size, cout_pi, cout, bf16_eup, per_basis_acc):
    out = ckan_conv_pallas(features, w_packed, zcenters=zcenters, inv_h=inv_h,
                           kdim=kdim, kpad=kpad, grid_size=grid_size,
                           bf16_eup=bf16_eup, per_basis_acc=per_basis_acc)
    # Slice the lane-dense slab first, transpose only the needed channels.
    pol = jnp.transpose(out[..., :cout_pi], (0, 3, 1, 2)).astype(jnp.float32)
    val = jnp.transpose(out[..., cout_pi:cout], (0, 3, 1, 2)).astype(jnp.float32)
    return pol, val


class KANHeadPallas:
    """JAX/Pallas equivalent of KAN_Head: two CKAN heads (policy 64ch, value 1ch)."""

    def __init__(self, feature_dim, last_layer_dim_pi, last_layer_dim_vf, grid, k,
                 key=jax.random.PRNGKey(0)):
        del k  # (KAN spline order `k` is not forwarded to CKAN in the reference)
        self.latent_dim_pi = last_layer_dim_pi
        self.latent_dim_vf = last_layer_dim_vf
        self.grid_size = grid
        self.kdim = feature_dim * 9                   # C_in * 3 * 3
        self.cout_pi = last_layer_dim_pi              # 64
        self.cout_vf = last_layer_dim_vf              # 1
        self.cout = self.cout_pi + self.cout_vf
        self.kpad = _round_up(self.kdim, 128)
        self.cout_pad = _round_up(self.cout, 128)

        # RBF grid: centers on [-2, 2] as Python floats (no device->host sync),
        # folded with inv_h so the kernel computes exp(-(x*inv_h - zc)^2).
        if grid > 1:
            centers = tuple(-2.0 + 4.0 * i / (grid - 1) for i in range(grid))
        else:
            centers = (0.0,)
        self.centers = centers
        self.inv_h = (grid - 1) / 4.0 if grid > 1 else 1.0
        self.zcenters = tuple(c * self.inv_h for c in centers)

        k1, k2, k3, k4 = jax.random.split(key, 4)
        scale_b = 1.0 / jnp.sqrt(self.kdim)
        scale_s = 1.0 / jnp.sqrt(self.kdim * grid)
        wb_pi = jax.random.normal(k1, (self.kdim, self.cout_pi), jnp.float32) * scale_b
        ws_pi = jax.random.normal(k2, (grid, self.kdim, self.cout_pi), jnp.float32) * scale_s
        wb_vf = jax.random.normal(k3, (self.kdim, self.cout_vf), jnp.float32) * scale_b
        ws_vf = jax.random.normal(k4, (grid, self.kdim, self.cout_vf), jnp.float32) * scale_s

        # Concatenate policy+value along the output axis (f32 copies for reference).
        # NOTE: K ordering follows lax.conv_general_dilated_patches; if
        # PyTorch-trained CKAN weights are ever loaded, verify it matches
        # torch.nn.Unfold's C_in*3*3 flattening order.
        self.w_base = jnp.concatenate([wb_pi, wb_vf], axis=1)          # (K, cout)
        self.w_spline = jnp.concatenate([ws_pi, ws_vf], axis=2)        # (G, K, cout)

        # Pack base + spline weights into one ((G+1)*KPAD, COUT_PAD) bf16 slab:
        # row-block 0 = base, row-block g+1 = spline_g; unused rows/cols = 0.
        w = jnp.zeros(((grid + 1) * self.kpad, self.cout_pad), jnp.float32)
        w = w.at[:self.kdim, :self.cout].set(self.w_base)
        for g in range(grid):
            r0 = (g + 1) * self.kpad
            w = w.at[r0:r0 + self.kdim, :self.cout].set(self.w_spline[g])
        self.w_packed = w.astype(jnp.bfloat16)

        # Chip-gated paths: bf16 EUP on v6e/v7x (f32 on v5e/older); per-basis
        # MRB accumulation only on v7x.
        try:
            kind = jax.devices()[0].device_kind.lower()
        except Exception:  # pragma: no cover
            kind = ""
        self._bf16_eup = ("v6" in kind) or ("v7" in kind) or ("7x" in kind)
        self._per_basis_acc = ("v7" in kind) or ("7x" in kind)

        self._forward = jax.jit(functools.partial(
            _kan_head_forward, zcenters=self.zcenters, inv_h=self.inv_h,
            kdim=self.kdim, kpad=self.kpad, grid_size=grid,
            cout_pi=self.cout_pi, cout=self.cout,
            bf16_eup=self._bf16_eup, per_basis_acc=self._per_basis_acc))

    def __call__(self, features):
        """features: (N, feature_dim, H, W) NCHW float32.

        Returns (latent_policy, latent_value):
          (N, 64, H-2, W-2), (N, 1, H-2, W-2)
        """
        return self._forward(features, self.w_packed)

    # pure-JAX reference (mirrors the kernel's bf16-stream / f32-accum semantics)
    def reference(self, features):
        patches = lax.conv_general_dilated_patches(
            features, filter_shape=(3, 3), window_strides=(1, 1), padding="VALID")
        n, _, ho, wo = patches.shape
        p = jnp.transpose(patches, (0, 2, 3, 1)).reshape(-1, self.kdim)
        p = p.astype(jnp.bfloat16).astype(jnp.float32)      # kernel input is bf16
        base = p * jax.nn.sigmoid(p)
        parts = [base]
        for zc in self.zcenters:
            parts.append(jnp.exp(-jnp.square(p * self.inv_h - zc)))
        a = jnp.concatenate(parts, axis=-1).astype(jnp.bfloat16).astype(jnp.float32)
        wb = self.w_base.astype(jnp.bfloat16).astype(jnp.float32)
        ws = self.w_spline.astype(jnp.bfloat16).astype(jnp.float32)
        wcat = jnp.concatenate([wb] + [ws[g] for g in range(self.grid_size)], axis=0)
        out = (a @ wcat).astype(jnp.bfloat16).astype(jnp.float32)  # bf16 output slab
        out = jnp.transpose(out.reshape(n, ho, wo, self.cout), (0, 3, 1, 2))
        return out[:, :self.cout_pi], out[:, self.cout_pi:]


if __name__ == "__main__":
    # Small shapes consistent with the module: NCHW feature maps.
    batch, feature_dim, spatial = 2, 4, 16
    grid, k = 5, 3

    root = jax.random.PRNGKey(0)
    wkey, xkey = jax.random.split(root)

    head = KANHeadPallas(feature_dim=feature_dim, last_layer_dim_pi=64,
                         last_layer_dim_vf=1, grid=grid, k=k, key=wkey)

    x = jax.random.normal(xkey, (batch, feature_dim, spatial, spatial), jnp.float32)

    pol, val = head(x)
    jax.block_until_ready((pol, val))

    pol_ref, val_ref = head.reference(x)
    assert pol.shape == (batch, 64, spatial - 2, spatial - 2)
    assert val.shape == (batch, 1, spatial - 2, spatial - 2)
    assert jnp.allclose(pol, pol_ref, atol=5e-2, rtol=5e-2)
    assert jnp.allclose(val, val_ref, atol=5e-2, rtol=5e-2)

    print("KERNEL_OK")
</pallas_src>

<mosaic_0001>
module attributes {stable_mosaic.version = 11 : i64} {
  func.func @_ckan_kernel_fused(%arg0: i32, %arg1: memref<128x128xbf16, #tpu.memory_space<vmem>>, %arg2: memref<768x128xbf16, #tpu.memory_space<vmem>>, %arg3: memref<128x128xbf16, #tpu.memory_space<vmem>>, %arg4: memref<128x768xbf16, #tpu.memory_space<vmem>>) attributes {dimension_semantics = [#tpu.dimension_semantics<parallel>], iteration_bounds = array<i64: 4>, scalar_prefetch = 0 : i64, scratch_operands = 1 : i64, tpu.core_type = #tpu.core_type<tc>, window_params = [{transform_indices = @transform_0, window_bounds = array<i64: 128, 128>}, {pipeline_mode = #tpu.pipeline_mode<synchronous>, transform_indices = @transform_1, window_bounds = array<i64: 768, 128>}, {transform_indices = @transform_2, window_bounds = array<i64: 128, 128>}]} {
    %c0 = arith.constant 0 : index
    %c0_0 = arith.constant 0 : index
    %0 = vector.load %arg1[%c0, %c0_0] : memref<128x128xbf16, #tpu.memory_space<vmem>>, vector<128x128xbf16>
    %1 = arith.extf %0 : vector<128x128xbf16> to vector<128x128xf32>
    %2 = arith.negf %1 : vector<128x128xf32>
    %3 = math.exp %2 : vector<128x128xf32>
    %cst = arith.constant 1.000000e+00 : f32
    %4 = vector.broadcast %cst : f32 to vector<128x128xf32>
    %5 = arith.addf %4, %3 : vector<128x128xf32>
    %6 = arith.divf %4, %5 : vector<128x128xf32>
    %7 = arith.mulf %1, %6 : vector<128x128xf32>
    %8 = arith.truncf %7 : vector<128x128xf32> to vector<128x128xbf16>
    %c0_1 = arith.constant 0 : index
    %c0_2 = arith.constant 0 : index
    %9 = vector.load %arg4[%c0_1, %c0_2] : memref<128x768xbf16, #tpu.memory_space<vmem>>, vector<128x128xbf16>
    tpu.vector_store %arg4[%c0_1, %c0_2], %8 {strides = array<i32>} : memref<128x768xbf16, #tpu.memory_space<vmem>>, vector<128x128xbf16>,
    %cst_3 = arith.constant 1.000000e+00 : f32
    %10 = vector.broadcast %cst_3 : f32 to vector<128x128xf32>
    %11 = arith.mulf %1, %10 : vector<128x128xf32>
    %cst_4 = arith.constant -2.000000e+00 : f32
    %12 = vector.broadcast %cst_4 : f32 to vector<128x128xf32>
    %13 = arith.subf %11, %12 : vector<128x128xf32>
    %14 = arith.mulf %13, %13 : vector<128x128xf32>
    %cst_5 = arith.constant 0.000000e+00 : f32
    %15 = vector.broadcast %cst_5 : f32 to vector<128x128xf32>
    %16 = arith.subf %15, %14 : vector<128x128xf32>
    %17 = math.exp %16 : vector<128x128xf32>
    %18 = arith.truncf %17 : vector<128x128xf32> to vector<128x128xbf16>
    %c0_6 = arith.constant 0 : index
    %c128 = arith.constant 128 : index
    %19 = vector.load %arg4[%c0_6, %c128] : memref<128x768xbf16, #tpu.memory_space<vmem>>, vector<128x128xbf16>
    tpu.vector_store %arg4[%c0_6, %c128], %18 {strides = array<i32>} : memref<128x768xbf16, #tpu.memory_space<vmem>>, vector<128x128xbf16>,
    %cst_7 = arith.constant -1.000000e+00 : f32
    %20 = vector.broadcast %cst_7 : f32 to vector<128x128xf32>
    %21 = arith.subf %11, %20 : vector<128x128xf32>
    %22 = arith.mulf %21, %21 : vector<128x128xf32>
    %cst_8 = arith.constant 0.000000e+00 : f32
    %23 = vector.broadcast %cst_8 : f32 to vector<128x128xf32>
    %24 = arith.subf %23, %22 : vector<128x128xf32>
    %25 = math.exp %24 : vector<128x128xf32>
    %26 = arith.truncf %25 : vector<128x128xf32> to vector<128x128xbf16>
    %c0_9 = arith.constant 0 : index
    %c256 = arith.constant 256 : index
    %27 = vector.load %arg4[%c0_9, %c256] : memref<128x768xbf16, #tpu.memory_space<vmem>>, vector<128x128xbf16>
    tpu.vector_store %arg4[%c0_9, %c256], %26 {strides = array<i32>} : memref<128x768xbf16, #tpu.memory_space<vmem>>, vector<128x128xbf16>,
    %cst_10 = arith.constant 0.000000e+00 : f32
    %28 = vector.broadcast %cst_10 : f32 to vector<128x128xf32>
    %29 = arith.subf %11, %28 : vector<128x128xf32>
    %30 = arith.mulf %29, %29 : vector<128x128xf32>
    %cst_11 = arith.constant 0.000000e+00 : f32
    %31 = vector.broadcast %cst_11 : f32 to vector<128x128xf32>
    %32 = arith.subf %31, %30 : vector<128x128xf32>
    %33 = math.exp %32 : vector<128x128xf32>
    %34 = arith.truncf %33 : vector<128x128xf32> to vector<128x128xbf16>
    %c0_12 = arith.constant 0 : index
    %c384 = arith.constant 384 : index
    %35 = vector.load %arg4[%c0_12, %c384] : memref<128x768xbf16, #tpu.memory_space<vmem>>, vector<128x128xbf16>
    tpu.vector_store %arg4[%c0_12, %c384], %34 {strides = array<i32>} : memref<128x768xbf16, #tpu.memory_space<vmem>>, vector<128x128xbf16>,
    %cst_13 = arith.constant 1.000000e+00 : f32
    %36 = vector.broadcast %cst_13 : f32 to vector<128x128xf32>
    %37 = arith.subf %11, %36 : vector<128x128xf32>
    %38 = arith.mulf %37, %37 : vector<128x128xf32>
    %cst_14 = arith.constant 0.000000e+00 : f32
    %39 = vector.broadcast %cst_14 : f32 to vector<128x128xf32>
    %40 = arith.subf %39, %38 : vector<128x128xf32>
    %41 = math.exp %40 : vector<128x128xf32>
    %42 = arith.truncf %41 : vector<128x128xf32> to vector<128x128xbf16>
    %c0_15 = arith.constant 0 : index
    %c512 = arith.constant 512 : index
    %43 = vector.load %arg4[%c0_15, %c512] : memref<128x768xbf16, #tpu.memory_space<vmem>>, vector<128x128xbf16>
    tpu.vector_store %arg4[%c0_15, %c512], %42 {strides = array<i32>} : memref<128x768xbf16, #tpu.memory_space<vmem>>, vector<128x128xbf16>,
    %cst_16 = arith.constant 2.000000e+00 : f32
    %44 = vector.broadcast %cst_16 : f32 to vector<128x128xf32>
    %45 = arith.subf %11, %44 : vector<128x128xf32>
    %46 = arith.mulf %45, %45 : vector<128x128xf32>
    %cst_17 = arith.constant 0.000000e+00 : f32
    %47 = vector.broadcast %cst_17 : f32 to vector<128x128xf32>
    %48 = arith.subf %47, %46 : vector<128x128xf32>
    %49 = math.exp %48 : vector<128x128xf32>
    %50 = arith.truncf %49 : vector<128x128xf32> to vector<128x128xbf16>
    %c0_18 = arith.constant 0 : index
    %c640 = arith.constant 640 : index
    %51 = vector.load %arg4[%c0_18, %c640] : memref<128x768xbf16, #tpu.memory_space<vmem>>, vector<128x128xbf16>
    tpu.vector_store %arg4[%c0_18, %c640], %50 {strides = array<i32>} : memref<128x768xbf16, #tpu.memory_space<vmem>>, vector<128x128xbf16>,
    %c0_19 = arith.constant 0 : index
    %c0_20 = arith.constant 0 : index
    %52 = vector.load %arg4[%c0_19, %c0_20] : memref<128x768xbf16, #tpu.memory_space<vmem>>, vector<128x768xbf16>
    %c0_21 = arith.constant 0 : index
    %c0_22 = arith.constant 0 : index
    %53 = vector.load %arg2[%c0_21, %c0_22] : memref<768x128xbf16, #tpu.memory_space<vmem>>, vector<768x128xbf16>
    %cst_23 = arith.constant dense<0.000000e+00> : vector<128x128xf32>
    %54 = tpu.matmul %52, %53, %cst_23 {dimension_numbers = #tpu.dot_dimension_numbers<[1], [0], [0], [1], [0, 0, 1, 1], [], []>} : vector<128x768xbf16>, vector<768x128xbf16>, vector<128x128xf32> -> vector<128x128xf32>
    %55 = arith.truncf %54 : vector<128x128xf32> to vector<128x128xbf16>
    %c0_24 = arith.constant 0 : index
    %c0_25 = arith.constant 0 : index
    %56 = vector.load %arg3[%c0_24, %c0_25] : memref<128x128xbf16, #tpu.memory_space<vmem>>, vector<128x128xbf16>
    tpu.vector_store %arg3[%c0_24, %c0_25], %55 {strides = array<i32>} : memref<128x128xbf16, #tpu.memory_space<vmem>>, vector<128x128xbf16>,
    return
  }
  func.func @transform_0(%arg0: i32) -> (i32, i32) {
    %c0_i32 = arith.constant 0 : i32
    %c0_i32_0 = arith.constant 0 : i32
    return %arg0, %c0_i32 : i32, i32
  }
  func.func @transform_1(%arg0: i32) -> (i32, i32) {
    %c0_i32 = arith.constant 0 : i32
    %c0_i32_0 = arith.constant 0 : i32
    %c0_i32_1 = arith.constant 0 : i32
    return %c0_i32, %c0_i32_0 : i32, i32
  }
  func.func @transform_2(%arg0: i32) -> (i32, i32) {
    %c0_i32 = arith.constant 0 : i32
    %c0_i32_0 = arith.constant 0 : i32
    return %arg0, %c0_i32 : i32, i32
  }
}

</mosaic_0001>

<bundles_post_ra>
// kernel: _kan_head_forward.1
= control target key start
LH: loop header
LB: loop body
LE: loop exit
PB: predicated region body
PF: predicated region fallthrough
CT: control target
= control target key end

     0   :  { %s2399_s9 = smov 0   ;;  %s2925_s0 = inlined_call_operand.vmem [shape: bf16[512,128], index: 0, kind: input, shape index: {}]   ;;  %s2926_s1 = inlined_call_operand.vmem [shape: bf16[768,128], index: 1, kind: input, shape index: {}]   ;;  %s2927_s2 = inlined_call_operand.vmem [shape: bf16[512,128], index: 2, kind: output, shape index: {}]  }
   0x1 LB: > { %s1631_s10 = sadd.s32 4294967295, %s2382_s9   ;;  %p1635_p0 = scmp.ge.s32.totalorder %s2382_s9, 1  ;;  %s2382_s9 = sphi %s2399_s9, %s12_s9  }
   0x2   : > { %p113_p1 = scmp.lt.s32.totalorder %s2382_s9, 5 }
   0x4   : > { %p114_p2 = pnand %p1635_p0, %p113_p1 }
   0x5   : > { %v2104_v0 = vld [vmem:[%s2926_s1 + $0x40] sm:$0xff] (!%p114_p2)   ;;  %s1636_s13 = sshll.u32 (!%p114_p2), %s1631_s10, 4  ;;  %v2106_v2 = vld [vmem:[%s2926_s1 + $0x48] sm:$0xff] (!%p114_p2)   ;;  %v2108_v4 = vld [vmem:[%s2926_s1 + $0x50] sm:$0xff] (!%p114_p2)  }
   0x6   : > { %117 = sbr.rel (%p114_p2) target bundleno = 386 (0x182), region = 28  ;;  %v2105_v1 = vld [vmem:[%s2926_s1] sm:$0xff] (!%p114_p2)   ;;  %2080 = vmatprep.subr.bf16.mxu1 (!%p114_p2), %v2104_v0  ;;  %1888 = vmatprep.subr.bf16.mxu0 (!%p114_p2), %v2104_v0  ;;  %p136_p3 = scmp.lt.s32.totalorder (!%p114_p2), %s1636_s13, 63  ;;  %v2107_v3 = vld [vmem:[%s2926_s1 + $0x8] sm:$0xff] (!%p114_p2)   ;;  %v2109_v5 = vld [vmem:[%s2926_s1 + $0x10] sm:$0xff] (!%p114_p2)  }
   0x7   : > { %2088 = vmatpush3.bf16.msra.mxu1 (!%p114_p2), %v2105_v1  ;;  %1889 = vmatpush3.bf16.msra.mxu0 (!%p114_p2), %v2105_v1  ;;  %v2110_v6 = vld [vmem:[%s2926_s1 + $0x58] sm:$0xff] (!%p114_p2)   ;;  %v2112_v8 = vld [vmem:[%s2926_s1 + $0x60] sm:$0xff] (!%p114_p2)   ;;  %v2114_v10 = vld [vmem:[%s2926_s1 + $0x68] sm:$0xff] (!%p114_p2)  }
   0x8   : > { %2081 = vmatprep.subr.bf16.mxu1 (!%p114_p2), %v2106_v2  ;;  %1890 = vmatprep.subr.bf16.mxu0 (!%p114_p2), %v2106_v2  ;;  %v2111_v7 = vld [vmem:[%s2926_s1 + $0x18] sm:$0xff] (!%p114_p2)   ;;  %v2113_v9 = vld [vmem:[%s2926_s1 + $0x20] sm:$0xff] (!%p114_p2)   ;;  %v2115_v13 = vld [vmem:[%s2926_s1 + $0x28] sm:$0xff] (!%p114_p2)  }
   0x9   : > { %v2116_v18 = vld [vmem:[%s2926_s1 + $0x70] sm:$0xff] (!%p114_p2)   ;;  %v2118_v37 = vld [vmem:[%s2926_s1 + $0x78] sm:$0xff] (!%p114_p2)   ;;  %v2120_v45 = vld [vmem:[%s2926_s1 + $0xc0] sm:$0xff] (!%p114_p2)  }
   0xa   : > { %v2117_v31 = vld [vmem:[%s2926_s1 + $0x30] sm:$0xff] (!%p114_p2)   ;;  %v2119_v40 = vld [vmem:[%s2926_s1 + $0x38] sm:$0xff] (!%p114_p2)   ;;  %v2122_v47 = vld [vmem:[%s2926_s1 + $0x140] sm:$0xff] (!%p114_p2)  }
   0xb   : > { %2089 = vmatpush3.bf16.msra.mxu1 (!%p114_p2), %v2107_v3  ;;  %1891 = vmatpush3.bf16.msra.mxu0 (!%p114_p2), %v2107_v3 }
   0xc   : > { %2082 = vmatprep.subr.bf16.mxu1 (!%p114_p2), %v2108_v4  ;;  %1892 = vmatprep.subr.bf16.mxu0 (!%p114_p2), %v2108_v4 }
   0xd   : > { %s2929_s13 = smov (!%p136_p3, %s1636_s13), 63 }
   0xe   : > { %s1637_s26 = sshll.u32 %s2929_s13, 2 }
   0xf   : > { %2090 = vmatpush3.bf16.msra.mxu1 %v2109_v5  ;;  %1893 = vmatpush3.bf16.msra.mxu0 %v2109_v5  ;;  %s2442_s5 = scalar_lea.vmem %s2925_s0, %s1637_s26  ;;  %s2898_s14 = scalar_lea.vmem %s2927_s2, %s1637_s26 }
  0x10   : > { %2083 = vmatprep.subr.bf16.mxu1 %v2110_v6  ;;  %1894 = vmatprep.subr.bf16.mxu0 %v2110_v6  ;;  %v1803_v11 = vld [vmem:[%s2442_s5] sm:$0xff]   ;;  %v1874_v48 = vld [vmem:[%s2442_s5 + $0x8] sm:$0xff]  }
  0x11   : > { %v1877_v12 = vld [vmem:[%s2442_s5 + $0x20] sm:$0xff]   ;;  %v2455_v14 = vunpack.c.l.bf16 %v1803_v11  ;;  %v2457_v15 = vunpack.c.h.bf16 %v1803_v11  ;;  %v1878_v49 = vld [vmem:[%s2442_s5 + $0x28] sm:$0xff]   ;;  %v2506_v53 = vunpack.c.l.bf16 %v1874_v48  ;;  %v2508_v54 = vunpack.c.h.bf16 %v1874_v48 }
  0x12   : > { %v2459_v16 = vunpack.c.l.bf16 %v1877_v12  ;;  %v2461_v17 = vunpack.c.h.bf16 %v1877_v12  ;;  %v2510_v55 = vunpack.c.l.bf16 %v1878_v49  ;;  %v2512_v56 = vunpack.c.h.bf16 %v1878_v49 }
  0x13   : > { %2091 = vmatpush3.bf16.msra.mxu1 %v2111_v7  ;;  %1895 = vmatpush3.bf16.msra.mxu0 %v2111_v7  ;;  %v1656_v19 = vadd.f32 2.0, %v2455_v14  ;;  %v1657_v20 = vadd.f32 2.0, %v2457_v15  ;;  %v1640_v23 = vmul.f32 -1.442695, %v2455_v14  ;;  %v1641_v24 = vmul.f32 -1.442695, %v2457_v15 }
  0x14   : > { %2084 = vmatprep.subr.bf16.mxu1 %v2112_v8  ;;  %1896 = vmatprep.subr.bf16.mxu0 %v2112_v8  ;;  %v1664_v21 = vadd.f32 2.0, %v2459_v16  ;;  %v1665_v22 = vadd.f32 2.0, %v2461_v17  ;;  %v1648_v25 = vmul.f32 -1.442695, %v2459_v16  ;;  %v500_v26 = vmul.f32 %v2455_v14, %v2455_v14 }
  0x15   : > { %v324_v27 = vmul.f32 %v1656_v19, %v1656_v19  ;;  %v325_v28 = vmul.f32 %v1657_v20, %v1657_v20  ;;  %2152 = vpow2.f32 %v1640_v23  ;;  %v1649_v32 = vmul.f32 -1.442695, %v2461_v17 }
  0x16   : > { %v332_v29 = vmul.f32 %v1664_v21, %v1664_v21  ;;  %v333_v30 = vmul.f32 %v1665_v22, %v1665_v22  ;;  %2154 = vpow2.f32 %v1641_v24  ;;  %v2484_v38 = vmul.f32 %v2457_v15, %v2457_v15 }
  0x17   : > { %2092 = vmatpush3.bf16.msra.mxu1 %v2113_v9  ;;  %1897 = vmatpush3.bf16.msra.mxu0 %v2113_v9  ;;  %v340_v33 = vsub.f32 0.0, %v324_v27  ;;  %v341_v34 = vsub.f32 0.0, %v325_v28  ;;  %v516_v39 = vsub.f32 0.0, %v500_v26  ;;  %2156 = vpow2.f32 %v1648_v25 }
  0x18   : > { %2085 = vmatprep.subr.bf16.mxu1 %v2114_v10  ;;  %1898 = vmatprep.subr.bf16.mxu0 %v2114_v10  ;;  %v348_v35 = vsub.f32 0.0, %v332_v29  ;;  %v349_v36 = vsub.f32 0.0, %v333_v30  ;;  %2158 = vpow2.f32 %v1649_v32  ;;  %v2494_v46 = vmul.f32 %v2459_v16, %v2459_v16 }
  0x19   : > { %v356_v41 = vmul.f32 1.442695, %v340_v33  ;;  %v358_v42 = vmul.f32 1.442695, %v341_v34  ;;  %v517_v50 = vsub.f32 0.0, %v2484_v38  ;;  %v2504_v52 = vmul.f32 %v2461_v17, %v2461_v17  ;;  %v2130_v38 = vld [vmem:[%s2926_s1 + $0x150] sm:$0xff]  }
  0x1a   : > { %v372_v43 = vmul.f32 1.442695, %v348_v35  ;;  %v374_v44 = vmul.f32 1.442695, %v349_v36  ;;  %v532_v51 = vmul.f32 1.442695, %v516_v39  ;;  %v2530_v33 = vmul.f32 %v2506_v53, %v2506_v53 }
  0x1b   : > { %2093 = vmatpush3.bf16.msra.mxu1 %v2115_v13  ;;  %1899 = vmatpush3.bf16.msra.mxu0 %v2115_v13  ;;  %2160 = vpow2.f32 %v356_v41  ;;  %v1704_v57 = vadd.f32 -2.0, %v2455_v14  ;;  %v1705_v58 = vadd.f32 -2.0, %v2457_v15  ;;  %v1658_v59 = vadd.f32 2.0, %v2506_v53  ;;  %v1875_v36 = vld [vmem:[%s2442_s5 + $0x10] sm:$0xff]  }
  0x1c   : > { %2086 = vmatprep.subr.bf16.mxu1 %v2116_v18  ;;  %1900 = vmatprep.subr.bf16.mxu0 %v2116_v18  ;;  %2162 = vpow2.f32 %v358_v42  ;;  %v1659_v60 = vadd.f32 2.0, %v2508_v54  ;;  %v1666_v61 = vadd.f32 2.0, %v2510_v55  ;;  %v1642_v62 = vmul.f32 -1.442695, %v2506_v53 }
  0x1d   : > { %2164 = vpow2.f32 %v372_v43  ;;  %v1667_v0 = vadd.f32 2.0, %v2512_v56  ;;  %v1643_v1 = vmul.f32 -1.442695, %v2508_v54  ;;  %v1650_v2 = vmul.f32 -1.442695, %v2510_v55 }
  0x1e   : > { %2166 = vpow2.f32 %v374_v44  ;;  %v326_v4 = vmul.f32 %v1658_v59, %v1658_v59  ;;  %v327_v5 = vmul.f32 %v1659_v60, %v1659_v60  ;;  %v334_v6 = vmul.f32 %v1666_v61, %v1666_v61  ;;  %v1879_v44 = vld [vmem:[%s2442_s5 + $0x30] sm:$0xff]  }
  0x1f   : > { %2094 = vmatpush3.bf16.msra.mxu1 %v2117_v31  ;;  %1901 = vmatpush3.bf16.msra.mxu0 %v2117_v31  ;;  %v2153_v63 = vpop.eup %2152  ;;  %2168 = vpow2.f32 %v532_v51  ;;  %v335_v8 = vmul.f32 %v1667_v0, %v1667_v0  ;;  %v1651_v9 = vmul.f32 -1.442695, %v2512_v56  ;;  %v2524_v10 = vmul.f32 %v1704_v57, %v1704_v57 }
  0x20   : > { %2087 = vmatprep.subr.bf16.mxu1 %v2118_v37  ;;  %1902 = vmatprep.subr.bf16.mxu0 %v2118_v37  ;;  %v228_v3 = vadd.f32 1.0, %v2153_v63  ;;  %v2155_v7 = vpop.eup %2154  ;;  %2170 = vpow2.f32 %v1642_v62  ;;  %v342_v13 = vsub.f32 0.0, %v326_v4  ;;  %v343_v18 = vsub.f32 0.0, %v327_v5 }
  0x21   : > { %v2157_v11 = vpop.eup %2156  ;;  %v229_v12 = vadd.f32 1.0, %v2155_v7  ;;  %v350_v21 = vsub.f32 0.0, %v334_v6  ;;  %v351_v22 = vsub.f32 0.0, %v335_v8  ;;  %v2526_v30 = vmul.f32 %v1705_v58, %v1705_v58 }
  0x22   : > { %2172 = vrcp.f32 %v228_v3  ;;  %v2159_v19 = vpop.eup %2158  ;;  %v236_v20 = vadd.f32 1.0, %v2157_v11  ;;  %v360_v25 = vmul.f32 1.442695, %v342_v13  ;;  %v362_v26 = vmul.f32 1.442695, %v343_v18 }
  0x23   : > { %2095 = vmatpush3.bf16.msra.mxu1 %v2119_v40  ;;  %1903 = vmatpush3.bf16.msra.mxu0 %v2119_v40  ;;  %2174 = vpow2.f32 %v1643_v1  ;;  %v237_v24 = vadd.f32 1.0, %v2159_v19  ;;  %v376_v28 = vmul.f32 1.442695, %v350_v21  ;;  %v378_v29 = vmul.f32 1.442695, %v351_v22  ;;  %v2126_v19 = vld [vmem:[%s2926_s1 + $0x148] sm:$0xff]  }
  0x24   : > { %1952 = vmatprep.subr.bf16.mxu1 %v2120_v45  ;;  %2016 = vmatprep.subr.bf16.mxu0 %v2122_v47  ;;  %2176 = vrcp.f32 %v229_v12  ;;  %v2534_v34 = vmul.f32 %v2508_v54, %v2508_v54  ;;  %v708_v37 = vsub.f32 0.0, %v2524_v10  ;;  %v2540_v39 = vmul.f32 %v2510_v55, %v2510_v55  ;;  %v2137_v10 = vld [vmem:[%s2926_s1 + $0xa0] sm:$0xff]  }
  0x25   : > { %v2161_v23 = vpop.eup %2160  ;;  %2178 = vrcp.f32 %v236_v20  ;;  %v2544_v40 = vmul.f32 %v2512_v56, %v2512_v56  ;;  %v2546_v42 = vunpack.c.l.bf16 %v1875_v36  ;;  %v2548_v43 = vunpack.c.h.bf16 %v1875_v36 }
  0x26   : > { %v2163_v27 = vpop.eup %2162  ;;  %2180 = vrcp.f32 %v237_v24  ;;  %v2553_v47 = vunpack.c.l.bf16 %v1879_v44  ;;  %v2555_v48 = vunpack.c.h.bf16 %v1879_v44  ;;  %v709_v49 = vsub.f32 0.0, %v2526_v30  ;;  %v2121_v24 = vld [vmem:[%s2926_s1 + $0x80] sm:$0xff]  }
  0x27   : > { %v2165_v31 = vpop.eup %2164  ;;  %v388_v32 = vpack.c.bf16 %v2163_v27, %v2161_v23  ;;  %2182 = vpow2.f32 %v360_v25  ;;  %v1660_v51 = vadd.f32 2.0, %v2546_v42  ;;  %v1661_v57 = vadd.f32 2.0, %v2548_v43 }
  0x28   : > { %v2167_v35 = vpop.eup %2166  ;;  %2184 = vpow2.f32 %v362_v26  ;;  %v1644_v58 = vmul.f32 -1.442695, %v2546_v42  ;;  %v1668_v60 = vadd.f32 2.0, %v2553_v47  ;;  %v1669_v61 = vadd.f32 2.0, %v2555_v48 }
  0x29   : > { %1236 = vmatprep.mubr.bf16.mxu0 %v388_v32  ;;  %v392_v41 = vpack.c.bf16 %v2167_v35, %v2165_v31  ;;  %v2551_v45 = vpop.eup %2168  ;;  %2186 = vpow2.f32 %v376_v28  ;;  %v1645_v62 = vmul.f32 -1.442695, %v2548_v43  ;;  %v328_v1 = vmul.f32 %v1660_v51, %v1660_v51  ;;  %v2124_v31 = vld [vmem:[%s2926_s1 + $0xc8] sm:$0xff]  }
  0x2a   : > { %2188 = vpow2.f32 %v378_v29  ;;  %v2171_v59 = vpop.eup %2170  ;;  %v329_v3 = vmul.f32 %v1661_v57, %v1661_v57  ;;  %v336_v6 = vmul.f32 %v1668_v60, %v1668_v60  ;;  %v337_v7 = vmul.f32 %v1669_v61, %v1669_v61  ;;  %v1876_v61 = vld [vmem:[%s2442_s5 + $0x18] sm:$0xff]  }
  0x2b   : > { %1268 = vmatprep.mubr.bf16.mxu1 %v392_v41  ;;  %2190 = vpow2.f32 %v1650_v2  ;;  %v230_v0 = vadd.f32 1.0, %v2171_v59  ;;  %v344_v2 = vsub.f32 0.0, %v328_v1  ;;  %v1652_v41 = vmul.f32 -1.442695, %v2553_v47  ;;  %v2127_v59 = vld [vmem:[%s2926_s1 + $0x108] sm:$0xff]  }
  0x2c   : > { %v2173_v63 = vpop.eup %2172  ;;  %2192 = vpow2.f32 %v1651_v9  ;;  %v345_v12 = vsub.f32 0.0, %v329_v3  ;;  %v2123_v9 = vld [vmem:[%s2926_s1 + $0x100] sm:$0xff]   ;;  %v352_v20 = vsub.f32 0.0, %v336_v6  ;;  %v353_v21 = vsub.f32 0.0, %v337_v7  ;;  %v1880_v3 = vld [vmem:[%s2442_s5 + $0x38] sm:$0xff]  }
  0x2d   : > { %v2175_v4 = vpop.eup %2174  ;;  %v276_v5 = vmul.f32 %v2173_v63, %v2455_v14  ;;  %2194 = vpow2.f32 %v1644_v58  ;;  %v364_v25 = vmul.f32 1.442695, %v344_v2  ;;  %v1653_v44 = vmul.f32 -1.442695, %v2555_v48 }
  0x2e   : > { %v2177_v8 = vpop.eup %2176  ;;  %v231_v11 = vadd.f32 1.0, %v2175_v4  ;;  %2196 = vrcp.f32 %v230_v0  ;;  %v366_v26 = vmul.f32 1.442695, %v345_v12  ;;  %v380_v32 = vmul.f32 1.442695, %v352_v20 }
  0x2f   : > { %v2179_v13 = vpop.eup %2178  ;;  %v277_v18 = vmul.f32 %v2177_v8, %v2457_v15  ;;  %2198 = vpow2.f32 %v1645_v62  ;;  %v382_v35 = vmul.f32 1.442695, %v353_v21  ;;  %v2584_v51 = vmul.f32 %v2546_v42, %v2546_v42 }
  0x30   : > { %v2181_v22 = vpop.eup %2180  ;;  %v284_v23 = vmul.f32 %v2179_v13, %v2459_v16  ;;  %2200 = vrcp.f32 %v231_v11  ;;  %v2592_v62 = vmul.f32 1.442695, %v517_v50  ;;  %v2594_v0 = vunpack.c.l.bf16 %v1876_v61  ;;  %v2125_v11 = vld [vmem:[%s2926_s1 + $0x88] sm:$0xff]  }
  0x31   : > { %v2183_v27 = vpop.eup %2182  ;;  %v292_v28 = vpack.c.bf16 %v277_v18, %v276_v5  ;;  %v285_v29 = vmul.f32 %v2181_v22, %v2461_v17  ;;  %2202 = vpow2.f32 %v364_v25  ;;  %v2596_v1 = vunpack.c.h.bf16 %v1876_v61  ;;  %v2138_v61 = vld [vmem:[%s2926_s1 + $0x160] sm:$0xff]  }
  0x32   : > { %v2185_v36 = vpop.eup %2184  ;;  %2204 = vpow2.f32 %v366_v26  ;;  %v2600_v4 = vadd.f32 1.0, %v2455_v14  ;;  %v2605_v50 = vunpack.c.l.bf16 %v1880_v3  ;;  %v2607_v7 = vunpack.c.h.bf16 %v1880_v3 }
  0x33   : > { %v2187_v57 = vpop.eup %2186  ;;  %1237 = vmatmul.mubr.bf16.vlgmr.msra.gmra.mrb[0].mxu0 %v292_v28  ;;  %v296_v58 = vpack.c.bf16 %v285_v29, %v284_v23  ;;  %v389_v60 = vpack.c.bf16 %v2185_v36, %v2183_v27  ;;  %2206 = vpow2.f32 %v380_v32  ;;  %v1662_v12 = vadd.f32 2.0, %v2594_v0  ;;  %v2129_v23 = vld [vmem:[%s2926_s1 + $0x90] sm:$0xff]   ;;  %v2134_v32 = vld [vmem:[%s2926_s1 + $0x158] sm:$0xff]  }
  0x34   : > { %v2189_v63 = vpop.eup %2188  ;;  %2017 = vmatpush3.bf16.msra.mxu0 %v2123_v9  ;;  %2208 = vpow2.f32 %v382_v35  ;;  %v1663_v13 = vadd.f32 2.0, %v2596_v1  ;;  %v2128_v9 = vld [vmem:[%s2926_s1 + $0xd0] sm:$0xff]   ;;  %v1670_v20 = vadd.f32 2.0, %v2605_v50  ;;  %v1671_v21 = vadd.f32 2.0, %v2607_v7 }
  0x35   : > { %v2191_v5 = vpop.eup %2190  ;;  %1269 = vmatmul.mubr.bf16.vlgmr.msra.gmra.mrb[0].mxu1 %v296_v58  ;;  %2018 = vmatprep.subr.bf16.mxu0 %v2126_v19  ;;  %v393_v6 = vpack.c.bf16 %v2189_v63, %v2187_v57  ;;  %2210 = vpow2.f32 %v1652_v41  ;;  %v330_v26 = vmul.f32 %v1662_v12, %v1662_v12  ;;  %v1688_v30 = vadd.f32 -1.0, %v2455_v14  ;;  %v2143_v14 = vld [vmem:[%s2926_s1 + $0x128] sm:$0xff]  }
  0x36   : > { %v2193_v8 = vpop.eup %2192  ;;  %1953 = vmatpush3.bf16.msra.mxu1 %v2121_v24  ;;  %1244 = vmatprep.mubr.bf16.mxu0 %v389_v60  ;;  %v238_v2 = vadd.f32 1.0, %v2191_v5  ;;  %2212 = vpow2.f32 %v1653_v44  ;;  %v2131_v24 = vld [vmem:[%s2926_s1 + $0x110] sm:$0xff]   ;;  %v331_v27 = vmul.f32 %v1663_v13, %v1663_v13  ;;  %v338_v35 = vmul.f32 %v1670_v20, %v1670_v20  ;;  %v2135_v44 = vld [vmem:[%s2926_s1 + $0x118] sm:$0xff]  }
  0x37   : > { %v2195_v18 = vpop.eup %2194  ;;  %1954 = vmatprep.subr.bf16.mxu1 %v2124_v31  ;;  %1276 = vmatprep.mubr.bf16.mxu1 %v393_v6  ;;  %v239_v19 = vadd.f32 1.0, %v2193_v8  ;;  %v2132_v31 = vld [vmem:[%s2926_s1 + $0xd8] sm:$0xff]   ;;  %v339_v36 = vmul.f32 %v1671_v21, %v1671_v21  ;;  %v346_v58 = vsub.f32 0.0, %v330_v26  ;;  %v1646_v5 = vmul.f32 -1.442695, %v2594_v0 }
  0x38   : > { %v2197_v22 = vpop.eup %2196  ;;  %2019 = vmatpush3.bf16.msra.mxu0 %v2127_v59  ;;  %2214 = vrcp.f32 %v238_v2  ;;  %v232_v25 = vadd.f32 1.0, %v2195_v18  ;;  %v347_v59 = vsub.f32 0.0, %v331_v27  ;;  %v354_v63 = vsub.f32 0.0, %v338_v35 }
  0x39   : > { %v2199_v28 = vpop.eup %2198  ;;  %v278_v29 = vmul.f32 %v2197_v22, %v2506_v53  ;;  %2216 = vrcp.f32 %v239_v19  ;;  %2020 = vmatprep.subr.bf16.mxu0 %v2130_v38  ;;  %v355_v3 = vsub.f32 0.0, %v339_v36  ;;  %v2133_v38 = vld [vmem:[%s2926_s1 + $0x98] sm:$0xff]   ;;  %v368_v8 = vmul.f32 1.442695, %v346_v58 }
  0x3a   : > { %v2201_v41 = vpop.eup %2200  ;;  %1955 = vmatpush3.bf16.msra.mxu1 %v2125_v11  ;;  %v233_v57 = vadd.f32 1.0, %v2199_v28  ;;  %2218 = vrcp.f32 %v232_v25  ;;  %v370_v11 = vmul.f32 1.442695, %v347_v59  ;;  %v1647_v2 = vmul.f32 -1.442695, %v2596_v1  ;;  %v2136_v25 = vld [vmem:[%s2926_s1 + $0xe0] sm:$0xff]  }
  0x3b   : > { %1956 = vmatprep.subr.bf16.mxu1 %v2128_v9  ;;  %v279_v60 = vmul.f32 %v2201_v41, %v2508_v54  ;;  %v2203_v6 = vpop.eup %2202  ;;  %v384_v18 = vmul.f32 1.442695, %v354_v63  ;;  %v386_v9 = vmul.f32 1.442695, %v355_v3  ;;  %v1654_v21 = vmul.f32 -1.442695, %v2605_v50 }
  0x3c   : > { %2021 = vmatpush3.bf16.msra.mxu0 %v2131_v24  ;;  %2220 = vrcp.f32 %v233_v57  ;;  %v2205_v12 = vpop.eup %2204  ;;  %v1655_v22 = vmul.f32 -1.442695, %v2607_v7  ;;  %v1673_v26 = vadd.f32 1.0, %v2457_v15  ;;  %v2658_v27 = vmul.f32 %v2548_v43, %v2548_v43  ;;  %v2142_v41 = vld [vmem:[%s2926_s1 + $0x168] sm:$0xff]  }
  0x3d   : > { %v293_v13 = vpack.c.bf16 %v279_v60, %v278_v29  ;;  %2022 = vmatprep.subr.bf16.mxu0 %v2134_v32  ;;  %2222 = vpow2.f32 %v1646_v5  ;;  %v2644_v19 = vpop.eup %2206  ;;  %v390_v20 = vpack.c.bf16 %v2205_v12, %v2203_v6  ;;  %v724_v32 = vmul.f32 1.442695, %v708_v37 }
  0x3e   : > { %1957 = vmatpush3.bf16.msra.mxu1 %v2129_v23  ;;  %2224 = vpow2.f32 %v368_v8  ;;  %v2648_v24 = vpop.eup %2208  ;;  %v420_v23 = vmul.f32 %v2600_v4, %v2600_v4  ;;  %v726_v4 = vmul.f32 1.442695, %v709_v49  ;;  %v1689_v37 = vadd.f32 -1.0, %v2457_v15 }
  0x3f   : > { %1245 = vmatmul.mubr.bf16.gmra.mrb[4].mxu0 %v293_v13  ;;  %1958 = vmatprep.subr.bf16.mxu1 %v2132_v31  ;;  %2226 = vpow2.f32 %v370_v11  ;;  %v2211_v28 = vpop.eup %2210  ;;  %v394_v29 = vpack.c.bf16 %v2648_v24, %v2644_v19  ;;  %v2139_v31 = vld [vmem:[%s2926_s1 + $0x120] sm:$0xff]   ;;  %v596_v15 = vmul.f32 %v1688_v30, %v1688_v30  ;;  %v2146_v11 = vld [vmem:[%s2926_s1 + $0x170] sm:$0xff]   ;;  %v518_v12 = vsub.f32 0.0, %v2530_v33 }
  0x40   : > { %2023 = vmatpush3.bf16.msra.mxu0 %v2135_v44  ;;  %1252 = vmatprep.mubr.bf16.mxu0 %v390_v20  ;;  %2228 = vpow2.f32 %v384_v18  ;;  %v2213_v35 = vpop.eup %2212  ;;  %v240_v36 = vadd.f32 1.0, %v2211_v28  ;;  %v421_v44 = vmul.f32 %v1673_v26, %v1673_v26  ;;  %v436_v57 = vsub.f32 0.0, %v420_v23 }
  0x41   : > { %2024 = vmatprep.subr.bf16.mxu0 %v2138_v61  ;;  %2230 = vpow2.f32 %v386_v9  ;;  %v241_v59 = vadd.f32 1.0, %v2213_v35  ;;  %v2140_v61 = vld [vmem:[%s2926_s1 + $0xe8] sm:$0xff]   ;;  %v612_v19 = vsub.f32 0.0, %v596_v15  ;;  %v519_v33 = vsub.f32 0.0, %v2534_v34  ;;  %v2150_v34 = vld [vmem:[%s2926_s1 + $0x178] sm:$0xff]  }
  0x42   : > { %v2215_v58 = vpop.eup %2214  ;;  %1959 = vmatpush3.bf16.msra.mxu1 %v2133_v38  ;;  %2232 = vpow2.f32 %v1647_v2  ;;  %v437_v63 = vsub.f32 0.0, %v421_v44  ;;  %v452_v3 = vmul.f32 1.442695, %v436_v57  ;;  %v597_v38 = vmul.f32 %v1689_v37, %v1689_v37  ;;  %v2141_v9 = vld [vmem:[%s2926_s1 + $0xa8] sm:$0xff]  }
  0x43   : > { %v2217_v49 = vpop.eup %2216  ;;  %v286_v60 = vmul.f32 %v2215_v58, %v2510_v55  ;;  %1960 = vmatprep.subr.bf16.mxu1 %v2136_v25  ;;  %2234 = vrcp.f32 %v240_v36  ;;  %v2144_v25 = vld [vmem:[%s2926_s1 + $0xf0] sm:$0xff]   ;;  %v536_v26 = vmul.f32 1.442695, %v518_v12  ;;  %v1706_v44 = vadd.f32 -2.0, %v2506_v53 }
  0x44   : > { %v2219_v5 = vpop.eup %2218  ;;  %v287_v6 = vmul.f32 %v2217_v49, %v2512_v56  ;;  %2236 = vrcp.f32 %v241_v59  ;;  %2025 = vmatpush3.bf16.msra.mxu0 %v2139_v31  ;;  %v454_v2 = vmul.f32 1.442695, %v437_v63  ;;  %v613_v20 = vsub.f32 0.0, %v597_v38  ;;  %v2151_v63 = vld [vmem:[%s2926_s1 + $0x138] sm:$0xff]  }
  0x45   : > { %v280_v8 = vmul.f32 %v2219_v5, %v2546_v42  ;;  %2026 = vmatprep.subr.bf16.mxu0 %v2142_v41  ;;  %2238 = vpow2.f32 %v1654_v21  ;;  %v628_v31 = vmul.f32 1.442695, %v612_v19  ;;  %v1674_v59 = vadd.f32 1.0, %v2506_v53 }
  0x46   : > { %v2221_v13 = vpop.eup %2220  ;;  %v297_v18 = vpack.c.bf16 %v287_v6, %v286_v60  ;;  %1961 = vmatpush3.bf16.msra.mxu1 %v2137_v10  ;;  %2240 = vpow2.f32 %v1655_v22  ;;  %v2147_v22 = vld [vmem:[%s2926_s1 + $0x130] sm:$0xff]   ;;  %v630_v35 = vmul.f32 1.442695, %v613_v20  ;;  %v694_v30 = vmul.f32 %v1706_v44, %v1706_v44 }
  0x47   : > { %v2223_v24 = vpop.eup %2222  ;;  %v281_v21 = vmul.f32 %v2221_v13, %v2548_v43  ;;  %1962 = vmatprep.subr.bf16.mxu1 %v2140_v61  ;;  %2242 = vpow2.f32 %v2592_v62  ;;  %v538_v62 = vmul.f32 1.442695, %v519_v33  ;;  %v1675_v37 = vadd.f32 1.0, %v2508_v54 }
  0x48   : > { %v2225_v23 = vpop.eup %2224  ;;  %1277 = vmatmul.mubr.bf16.gmra.mrb[4].mxu1 %v297_v18  ;;  %2027 = vmatpush3.bf16.msra.mxu0 %v2143_v14  ;;  %v234_v28 = vadd.f32 1.0, %v2223_v24  ;;  %2244 = vpow2.f32 %v724_v32  ;;  %v2145_v32 = vld [vmem:[%s2926_s1 + $0xb0] sm:$0xff]   ;;  %v1690_v49 = vadd.f32 -1.0, %v2506_v53  ;;  %v422_v6 = vmul.f32 %v1674_v59, %v1674_v59 }
  0x49   : > { %v2227_v36 = vpop.eup %2226  ;;  %1284 = vmatprep.mubr.bf16.mxu1 %v394_v29  ;;  %v294_v41 = vpack.c.bf16 %v281_v21, %v280_v8  ;;  %2028 = vmatprep.subr.bf16.mxu0 %v2146_v11  ;;  %2246 = vpow2.f32 %v726_v4  ;;  %v1707_v29 = vadd.f32 -2.0, %v2508_v54  ;;  %v2148_v4 = vld [vmem:[%s2926_s1 + $0xf8] sm:$0xff]   ;;  %v423_v38 = vmul.f32 %v1675_v37, %v1675_v37 }
  0x4a   : > { %v2706_v57 = vpop.eup %2228  ;;  %1963 = vmatpush3.bf16.msra.mxu1 %v2141_v9  ;;  %v391_v58 = vpack.c.bf16 %v2227_v36, %v2225_v23  ;;  %2248 = vrcp.f32 %v234_v28  ;;  %v2149_v11 = vld [vmem:[%s2926_s1 + $0xb8] sm:$0xff]   ;;  %v438_v13 = vsub.f32 0.0, %v422_v6  ;;  %v1691_v36 = vadd.f32 -1.0, %v2508_v54 }
  0x4b   : > { %v2231_v10 = vpop.eup %2230  ;;  %1253 = vmatmul.mubr.bf16.gmra.mrb[8].mxu0 %v294_v41  ;;  %1964 = vmatprep.subr.bf16.mxu1 %v2144_v25  ;;  %2250 = vpow2.f32 %v452_v3  ;;  %v695_v5 = vmul.f32 %v1707_v29, %v1707_v29  ;;  %v710_v3 = vsub.f32 0.0, %v694_v30  ;;  %v439_v19 = vsub.f32 0.0, %v423_v38 }
  0x4c   : > { %v2233_v60 = vpop.eup %2232  ;;  %1260 = vmatprep.mubr.bf16.mxu0 %v391_v58  ;;  %v395_v61 = vpack.c.bf16 %v2231_v10, %v2706_v57  ;;  %2029 = vmatpush3.bf16.msra.mxu0 %v2147_v22  ;;  %2252 = vpow2.f32 %v454_v2  ;;  %v456_v25 = vmul.f32 1.442695, %v438_v13  ;;  %v598_v41 = vmul.f32 %v1690_v49, %v1690_v49 }
  0x4d   : > { %v2235_v14 = vpop.eup %2234  ;;  %v235_v15 = vadd.f32 1.0, %v2233_v60  ;;  %2030 = vmatprep.subr.bf16.mxu0 %v2150_v34  ;;  %2254 = vpow2.f32 %v628_v31  ;;  %v711_v12 = vsub.f32 0.0, %v695_v5  ;;  %v728_v9 = vmul.f32 1.442695, %v710_v3 }
  0x4e   : > { %v2237_v8 = vpop.eup %2236  ;;  %v288_v53 = vmul.f32 %v2235_v14, %v2553_v47  ;;  %1965 = vmatpush3.bf16.msra.mxu1 %v2145_v32  ;;  %2256 = vpow2.f32 %v630_v35  ;;  %v458_v22 = vmul.f32 1.442695, %v439_v19  ;;  %v521_v44 = vsub.f32 0.0, %v2658_v27 }
  0x4f   : > { %v2239_v2 = vpop.eup %2238  ;;  %v289_v18 = vmul.f32 %v2237_v8, %v2555_v48  ;;  %2258 = vrcp.f32 %v235_v15  ;;  %1966 = vmatprep.subr.bf16.mxu1 %v2148_v4  ;;  %v730_v21 = vmul.f32 1.442695, %v711_v12  ;;  %v599_v32 = vmul.f32 %v1691_v36, %v1691_v36 }
  0x50   : > { %v2241_v20 = vpop.eup %2240  ;;  %v242_v24 = vadd.f32 1.0, %v2239_v2  ;;  %2031 = vmatpush3.bf16.msra.mxu0 %v2151_v63  ;;  %2260 = vpow2.f32 %v536_v26  ;;  %v520_v26 = vsub.f32 0.0, %v2584_v51  ;;  %v614_v29 = vsub.f32 0.0, %v598_v41 }
  0x51   : > { %v2727_v33 = vpop.eup %2242  ;;  %v298_v23 = vpack.c.bf16 %v289_v18, %v288_v53  ;;  %v243_v28 = vadd.f32 1.0, %v2241_v20  ;;  %2262 = vpow2.f32 %v538_v62  ;;  %v1708_v62 = vadd.f32 -2.0, %v2546_v42 }
  0x52   : > { %v2729_v31 = vpop.eup %2244  ;;  %2264 = vrcp.f32 %v242_v24  ;;  %1967 = vmatpush3.bf16.msra.mxu1 %v2149_v11  ;;  %v564_v35 = vpack.c.bf16 %v2727_v33, %v2551_v45  ;;  %v540_v10 = vmul.f32 1.442695, %v520_v26  ;;  %v542_v4 = vmul.f32 1.442695, %v521_v44 }
  0x53   : > { %v2734_v34 = vpop.eup %2246  ;;  %1285 = vmatmul.mubr.bf16.gmra.mrb[8].mxu1 %v298_v23  ;;  %2266 = vrcp.f32 %v243_v28  ;;  %v615_v27 = vsub.f32 0.0, %v599_v32  ;;  %v632_v30 = vmul.f32 1.442695, %v614_v29  ;;  %v1709_v37 = vadd.f32 -2.0, %v2548_v43 }
  0x54   : > { %v2249_v57 = vpop.eup %2248  ;;  %1292 = vmatprep.mubr.bf16.mxu1 %v395_v61  ;;  %v756_v58 = vpack.c.bf16 %v2734_v34, %v2729_v31  ;;  %2268 = vpow2.f32 %v728_v9  ;;  %v696_v61 = vmul.f32 %v1708_v62, %v1708_v62  ;;  %v1676_v63 = vadd.f32 1.0, %v2546_v42 }
  0x55   : > { %v2741_v54 = vpop.eup %2250  ;;  %v282_v59 = vmul.f32 %v2249_v57, %v2594_v0  ;;  %2270 = vpow2.f32 %v730_v21  ;;  %v634_v6 = vmul.f32 1.442695, %v615_v27  ;;  %v697_v14 = vmul.f32 %v1709_v37, %v1709_v37 }
  0x56   : > { %v2744_v51 = vpop.eup %2252  ;;  %2272 = vpow2.f32 %v456_v25  ;;  %v1677_v15 = vadd.f32 1.0, %v2548_v43  ;;  %v712_v8 = vsub.f32 0.0, %v696_v61  ;;  %v424_v53 = vmul.f32 %v1676_v63, %v1676_v63 }
  0x57   : > { %v2747_v49 = vpop.eup %2254  ;;  %v484_v60 = vpack.c.bf16 %v2744_v51, %v2741_v54  ;;  %2274 = vpow2.f32 %v458_v22  ;;  %v713_v13 = vsub.f32 0.0, %v697_v14  ;;  %v1692_v20 = vadd.f32 -1.0, %v2546_v42 }
  0x58   : > { %v2752_v5 = vpop.eup %2256  ;;  %2276 = vpow2.f32 %v632_v30  ;;  %v425_v2 = vmul.f32 %v1677_v15, %v1677_v15  ;;  %v732_v9 = vmul.f32 1.442695, %v712_v8  ;;  %v440_v19 = vsub.f32 0.0, %v424_v53 }
  0x59   : > { %v2259_v3 = vpop.eup %2258  ;;  %v660_v38 = vpack.c.bf16 %v2752_v5, %v2747_v49  ;;  %2278 = vpow2.f32 %v540_v10  ;;  %v734_v23 = vmul.f32 1.442695, %v713_v13  ;;  %v1693_v41 = vadd.f32 -1.0, %v2548_v43 }
  0x5a   : > { %v2757_v11 = vpop.eup %2260  ;;  %v283_v12 = vmul.f32 %v2259_v3, %v2596_v1  ;;  %2280 = vpow2.f32 %v634_v6  ;;  %v441_v28 = vsub.f32 0.0, %v425_v2  ;;  %v460_v36 = vmul.f32 1.442695, %v440_v19 }
  0x5b   : > { %v2760_v18 = vpop.eup %2262  ;;  %2282 = vpow2.f32 %v542_v4  ;;  %v600_v44 = vmul.f32 %v1692_v20, %v1692_v20  ;;  %v601_v57 = vmul.f32 %v1693_v41, %v1693_v41  ;;  %v506_v32 = vmul.f32 %v2594_v0, %v2594_v0 }
  0x5c   : > { %v2265_v24 = vpop.eup %2264  ;;  %v295_v21 = vpack.c.bf16 %v283_v12, %v282_v59  ;;  %v565_v25 = vpack.c.bf16 %v2760_v18, %v2757_v11  ;;  %2284 = vpow2.f32 %v732_v9  ;;  %v462_v42 = vmul.f32 1.442695, %v441_v28 }
  0x5d   : > { %v2267_v22 = vpop.eup %2266  ;;  %v290_v31 = vmul.f32 %v2265_v24, %v2605_v50  ;;  %2286 = vpow2.f32 %v734_v23  ;;  %v507_v29 = vmul.f32 %v2596_v1, %v2596_v1  ;;  %v616_v4 = vsub.f32 0.0, %v600_v44 }
  0x5e   : > { %v2269_v34 = vpop.eup %2268  ;;  %1261 = vmatmul.mubr.bf16.gmra.mrb[12].mxu0 %v295_v21  ;;  %v291_v26 = vmul.f32 %v2267_v22, %v2607_v7  ;;  %2288 = vpow2.f32 %v460_v36  ;;  %v617_v30 = vsub.f32 0.0, %v601_v57  ;;  %v522_v37 = vsub.f32 0.0, %v506_v32 }
  0x5f   : > { %v2271_v62 = vpop.eup %2270  ;;  %1430 = vmatprep.mubr.bf16.mxu0 %v756_v58  ;;  %2290 = vpow2.f32 %v462_v42  ;;  %v523_v61 = vsub.f32 0.0, %v507_v29  ;;  %v1710_v58 = vadd.f32 -2.0, %v2594_v0  ;;  %v636_v14 = vmul.f32 1.442695, %v616_v4 }
  0x60   : > { %v2772_v59 = vpop.eup %2272  ;;  %v299_v43 = vpack.c.bf16 %v291_v26, %v290_v31  ;;  %v757_v10 = vpack.c.bf16 %v2271_v62, %v2269_v34  ;;  %v1711_v15 = vadd.f32 -2.0, %v2596_v1  ;;  %v1678_v3 = vadd.f32 1.0, %v2594_v0 }
  0x61   : > { %v2774_v27 = vpop.eup %2274  ;;  %v638_v53 = vmul.f32 1.442695, %v617_v30  ;;  %v544_v12 = vmul.f32 1.442695, %v522_v37  ;;  %v546_v13 = vmul.f32 1.442695, %v523_v61  ;;  %v698_v2 = vmul.f32 %v1710_v58, %v1710_v58 }
  0x62   : > { %v2777_v63 = vpop.eup %2276  ;;  %1293 = vmatmul.mubr.bf16.gmra.mrb[12].mxu1 %v299_v43  ;;  %v485_v6 = vpack.c.bf16 %v2774_v27, %v2772_v59  ;;  %2292 = vpow2.f32 %v636_v14  ;;  %v699_v19 = vmul.f32 %v1711_v15, %v1711_v15  ;;  %v1679_v20 = vadd.f32 1.0, %v2596_v1 }
  0x63   : > { %v2783_v8 = vpop.eup %2278  ;;  %1333 = vmatprep.mubr.bf16.mxu1 %v564_v35  ;;  %v426_v24 = vmul.f32 %v1678_v3, %v1678_v3  ;;  %2294 = vpow2.f32 %v638_v53  ;;  %v714_v28 = vsub.f32 0.0, %v698_v2  ;;  %v1694_v22 = vadd.f32 -1.0, %v2594_v0 }
  0x64   : > { %v2281_v9 = vpop.eup %2280  ;;  %2296 = vpow2.f32 %v544_v12  ;;  %v715_v33 = vsub.f32 0.0, %v699_v19  ;;  %v427_v35 = vmul.f32 %v1679_v20, %v1679_v20  ;;  %v1695_v34 = vadd.f32 -1.0, %v2596_v1 }
  0x65   : > { %v2789_v21 = vpop.eup %2282  ;;  %v661_v23 = vpack.c.bf16 %v2281_v9, %v2777_v63  ;;  %2298 = vpow2.f32 %v546_v13  ;;  %v736_v36 = vmul.f32 1.442695, %v714_v28  ;;  %v442_v41 = vsub.f32 0.0, %v426_v24 }
  0x66   : > { %1431 = vmatmul.mubr.bf16.vlgmr.msra.gmra.mrb[16].mxu0 %v660_v38  ;;  %v566_v45 = vpack.c.bf16 %v2789_v21, %v2783_v8  ;;  %v2285_v31 = vpop.eup %2284  ;;  %v738_v42 = vmul.f32 1.442695, %v715_v33  ;;  %v443_v0 = vsub.f32 0.0, %v427_v35  ;;  %v602_v44 = vmul.f32 %v1694_v22, %v1694_v22 }
  0x67   : > { %1438 = vmatprep.mubr.bf16.mxu0 %v757_v10  ;;  %v2287_v26 = vpop.eup %2286  ;;  %v524_v49 = vsub.f32 0.0, %v2494_v46  ;;  %2300 = vpow2.f32 %v736_v36  ;;  %v464_v62 = vmul.f32 1.442695, %v442_v41  ;;  %v603_v57 = vmul.f32 %v1695_v34, %v1695_v34 }
  0x68   : > { %v2800_v5 = vpop.eup %2288  ;;  %v758_v38 = vpack.c.bf16 %v2287_v26, %v2285_v31  ;;  %2302 = vpow2.f32 %v738_v42  ;;  %v466_v1 = vmul.f32 1.442695, %v443_v0  ;;  %v618_v29 = vsub.f32 0.0, %v602_v44 }
  0x69   : > { %v2802_v32 = vpop.eup %2290  ;;  %v525_v43 = vsub.f32 0.0, %v2504_v52  ;;  %2304 = vpow2.f32 %v464_v62  ;;  %v619_v10 = vsub.f32 0.0, %v603_v57  ;;  %v548_v4 = vmul.f32 1.442695, %v524_v49 }
  0x6a   : > { %1334 = vmatmul.mubr.bf16.vlgmr.msra.gmra.mrb[16].mxu1 %v484_v60  ;;  %v486_v46 = vpack.c.bf16 %v2802_v32, %v2800_v5  ;;  %2306 = vpow2.f32 %v466_v1  ;;  %v640_v30 = vmul.f32 1.442695, %v618_v29  ;;  %v1712_v54 = vadd.f32 -2.0, %v2459_v16 }
  0x6b   : > { %1341 = vmatprep.mubr.bf16.mxu1 %v565_v25  ;;  %v550_v37 = vmul.f32 1.442695, %v525_v43  ;;  %v642_v51 = vmul.f32 1.442695, %v619_v10  ;;  %2308 = vpow2.f32 %v548_v4  ;;  %v1713_v60 = vadd.f32 -2.0, %v2461_v17 }
  0x6c   : > { %v1680_v52 = vadd.f32 1.0, %v2459_v16  ;;  %v2293_v61 = vpop.eup %2292  ;;  %2310 = vpow2.f32 %v640_v30  ;;  %v700_v11 = vmul.f32 %v1712_v54, %v1712_v54  ;;  %v1681_v18 = vadd.f32 1.0, %v2461_v17 }
  0x6d   : > { %v1696_v25 = vadd.f32 -1.0, %v2459_v16  ;;  %v2295_v58 = vpop.eup %2294  ;;  %2312 = vpow2.f32 %v642_v51  ;;  %v701_v63 = vmul.f32 %v1713_v60, %v1713_v60  ;;  %v1697_v15 = vadd.f32 -1.0, %v2461_v17 }
  0x6e   : > { %1439 = vmatmul.mubr.bf16.gmra.mrb[20].mxu0 %v661_v23  ;;  %v428_v14 = vmul.f32 %v1680_v52, %v1680_v52  ;;  %v2297_v3 = vpop.eup %2296  ;;  %v662_v53 = vpack.c.bf16 %v2295_v58, %v2293_v61  ;;  %2314 = vpow2.f32 %v550_v37  ;;  %v716_v12 = vsub.f32 0.0, %v700_v11 }
  0x6f   : > { %1446 = vmatprep.mubr.bf16.mxu0 %v758_v38  ;;  %v429_v13 = vmul.f32 %v1681_v18, %v1681_v18  ;;  %v2299_v2 = vpop.eup %2298  ;;  %v717_v9 = vsub.f32 0.0, %v701_v63  ;;  %v604_v20 = vmul.f32 %v1696_v25, %v1696_v25  ;;  %v605_v24 = vmul.f32 %v1697_v15, %v1697_v15 }
  0x70   : > { %v444_v19 = vsub.f32 0.0, %v428_v14  ;;  %v567_v16 = vpack.c.bf16 %v2299_v2, %v2297_v3  ;;  %v740_v23 = vmul.f32 1.442695, %v716_v12  ;;  %v526_v22 = vsub.f32 0.0, %v2540_v39 }
  0x71   : > { %v445_v28 = vsub.f32 0.0, %v429_v13  ;;  %v2301_v17 = vpop.eup %2300  ;;  %v742_v33 = vmul.f32 1.442695, %v717_v9  ;;  %v620_v31 = vsub.f32 0.0, %v604_v20  ;;  %v621_v36 = vsub.f32 0.0, %v605_v24 }
  0x72   : > { %1342 = vmatmul.mubr.bf16.gmra.mrb[20].mxu1 %v485_v6  ;;  %v468_v35 = vmul.f32 1.442695, %v444_v19  ;;  %v2303_v41 = vpop.eup %2302  ;;  %2316 = vpow2.f32 %v740_v23  ;;  %v527_v59 = vsub.f32 0.0, %v2544_v40  ;;  %v552_v27 = vmul.f32 1.442695, %v526_v22 }
  0x73   : > { %1349 = vmatprep.mubr.bf16.mxu1 %v566_v45  ;;  %v470_v34 = vmul.f32 1.442695, %v445_v28  ;;  %v2827_v6 = vpop.eup %2304  ;;  %v759_v26 = vpack.c.bf16 %v2303_v41, %v2301_v17  ;;  %2318 = vpow2.f32 %v742_v33  ;;  %v644_v39 = vmul.f32 1.442695, %v620_v31 }
  0x74   : > { %v646_v42 = vmul.f32 1.442695, %v621_v36  ;;  %v2829_v0 = vpop.eup %2306  ;;  %2320 = vpow2.f32 %v468_v35  ;;  %v554_v8 = vmul.f32 1.442695, %v527_v59  ;;  %v1714_v21 = vadd.f32 -2.0, %v2510_v55 }
  0x75   : > { %v1715_v45 = vadd.f32 -2.0, %v2512_v56  ;;  %v2833_v44 = vpop.eup %2308  ;;  %v487_v40 = vpack.c.bf16 %v2829_v0, %v2827_v6  ;;  %2322 = vpow2.f32 %v470_v34  ;;  %v1682_v49 = vadd.f32 1.0, %v2510_v55 }
  0x76   : > { %1447 = vmatmul.mubr.bf16.gmra.mrb[24].mxu0 %v662_v53  ;;  %v1683_v38 = vadd.f32 1.0, %v2512_v56  ;;  %v2311_v62 = vpop.eup %2310  ;;  %2324 = vpow2.f32 %v644_v39  ;;  %v702_v57 = vmul.f32 %v1714_v21, %v1714_v21  ;;  %v1698_v29 = vadd.f32 -1.0, %v2510_v55 }
  0x77   : > { %1454 = vmatprep.mubr.bf16.mxu0 %v759_v26  ;;  %v703_v1 = vmul.f32 %v1715_v45, %v1715_v45  ;;  %v2313_v43 = vpop.eup %2312  ;;  %2326 = vpow2.f32 %v646_v42  ;;  %v430_v10 = vmul.f32 %v1682_v49, %v1682_v49  ;;  %v1699_v30 = vadd.f32 -1.0, %v2512_v56 }
  0x78   : > { %v431_v4 = vmul.f32 %v1683_v38, %v1683_v38  ;;  %v2315_v37 = vpop.eup %2314  ;;  %v663_v54 = vpack.c.bf16 %v2313_v43, %v2311_v62  ;;  %2328 = vpow2.f32 %v552_v27  ;;  %v718_v51 = vsub.f32 0.0, %v702_v57 }
  0x79   : > { %v719_v60 = vsub.f32 0.0, %v703_v1  ;;  %v568_v52 = vpack.c.bf16 %v2315_v37, %v2833_v44  ;;  %2330 = vpow2.f32 %v554_v8  ;;  %v446_v55 = vsub.f32 0.0, %v430_v10 }
  0x7a   : > { %1350 = vmatmul.mubr.bf16.gmra.mrb[24].mxu1 %v486_v46  ;;  %v447_v61 = vsub.f32 0.0, %v431_v4  ;;  %v744_v11 = vmul.f32 1.442695, %v718_v51  ;;  %v606_v25 = vmul.f32 %v1698_v29, %v1698_v29  ;;  %v607_v58 = vmul.f32 %v1699_v30, %v1699_v30 }
  0x7b   : > { %1357 = vmatprep.mubr.bf16.mxu1 %v567_v16  ;;  %v746_v18 = vmul.f32 1.442695, %v719_v60  ;;  %v472_v56 = vmul.f32 1.442695, %v446_v55  ;;  %v512_v5 = vmul.f32 %v2553_v47, %v2553_v47  ;;  %v513_v32 = vmul.f32 %v2555_v48, %v2555_v48 }
  0x7c   : > { %v474_v63 = vmul.f32 1.442695, %v447_v61  ;;  %v2317_v46 = vpop.eup %2316  ;;  %2332 = vpow2.f32 %v744_v11  ;;  %v622_v14 = vsub.f32 0.0, %v606_v25  ;;  %v623_v15 = vsub.f32 0.0, %v607_v58 }
  0x7d   : > { %v1716_v3 = vadd.f32 -2.0, %v2553_v47  ;;  %v2319_v53 = vpop.eup %2318  ;;  %2334 = vpow2.f32 %v746_v18  ;;  %v528_v12 = vsub.f32 0.0, %v512_v5  ;;  %v529_v13 = vsub.f32 0.0, %v513_v32 }
  0x7e   : > { %1455 = vmatmul.mubr.bf16.gmra.mrb[28].mxu0 %v663_v54  ;;  %v1717_v2 = vadd.f32 -2.0, %v2555_v48  ;;  %v2321_v9 = vpop.eup %2320  ;;  %v760_v19 = vpack.c.bf16 %v2319_v53, %v2317_v46  ;;  %2336 = vpow2.f32 %v472_v56  ;;  %v648_v20 = vmul.f32 1.442695, %v622_v14 }
  0x7f   : > { %v650_v24 = vmul.f32 1.442695, %v623_v15  ;;  %v2323_v16 = vpop.eup %2322  ;;  %2338 = vpow2.f32 %v474_v63  ;;  %v556_v23 = vmul.f32 1.442695, %v528_v12  ;;  %v558_v28 = vmul.f32 1.442695, %v529_v13 }
  0x80   : > { %v704_v22 = vmul.f32 %v1716_v3, %v1716_v3  ;;  %v2325_v17 = vpop.eup %2324  ;;  %1462 = vmatprep.mubr.bf16.mxu0 %v760_v19  ;;  %v488_v33 = vpack.c.bf16 %v2323_v16, %v2321_v9  ;;  %2340 = vpow2.f32 %v648_v20  ;;  %v705_v35 = vmul.f32 %v1717_v2, %v1717_v2 }
  0x81   : > { %v1684_v31 = vadd.f32 1.0, %v2553_v47  ;;  %v2327_v36 = vpop.eup %2326  ;;  %2342 = vpow2.f32 %v650_v24  ;;  %v1685_v34 = vadd.f32 1.0, %v2555_v48  ;;  %v1700_v59 = vadd.f32 -1.0, %v2553_v47 }
  0x82   : > { %1358 = vmatmul.mubr.bf16.gmra.mrb[28].mxu1 %v487_v40  ;;  %v720_v41 = vsub.f32 0.0, %v704_v22  ;;  %v2329_v27 = vpop.eup %2328  ;;  %v664_v6 = vpack.c.bf16 %v2327_v36, %v2325_v17  ;;  %2344 = vpow2.f32 %v556_v23  ;;  %v721_v26 = vsub.f32 0.0, %v705_v35 }
  0x83   : > { %1365 = vmatprep.mubr.bf16.mxu1 %v568_v52  ;;  %v432_v39 = vmul.f32 %v1684_v31, %v1684_v31  ;;  %v2331_v42 = vpop.eup %2330  ;;  %2346 = vpow2.f32 %v558_v28  ;;  %v433_v8 = vmul.f32 %v1685_v34, %v1685_v34  ;;  %v1701_v21 = vadd.f32 -1.0, %v2555_v48 }
  0x84   : > { %v748_v0 = vmul.f32 1.442695, %v720_v41  ;;  %v569_v45 = vpack.c.bf16 %v2331_v42, %v2329_v27  ;;  %v750_v44 = vmul.f32 1.442695, %v721_v26  ;;  %v608_v49 = vmul.f32 %v1700_v59, %v1700_v59 }
  0x85   : > { %v448_v40 = vsub.f32 0.0, %v432_v39  ;;  %v449_v38 = vsub.f32 0.0, %v433_v8  ;;  %v609_v62 = vmul.f32 %v1701_v21, %v1701_v21  ;;  %v514_v47 = vmul.f32 %v2605_v50, %v2605_v50 }
  0x86   : > { %1463 = vmatmul.mubr.bf16.gmra.mrb[32].mxu0 %v664_v6  ;;  %2348 = vpow2.f32 %v748_v0  ;;  %v2333_v57 = vpop.eup %2332  ;;  %v624_v29 = vsub.f32 0.0, %v608_v49  ;;  %v515_v43 = vmul.f32 %v2607_v7, %v2607_v7  ;;  %v1718_v37 = vadd.f32 -2.0, %v2605_v50 }
  0x87   : > { %2350 = vpow2.f32 %v750_v44  ;;  %v476_v1 = vmul.f32 1.442695, %v448_v40  ;;  %v2335_v10 = vpop.eup %2334  ;;  %v478_v48 = vmul.f32 1.442695, %v449_v38  ;;  %v625_v4 = vsub.f32 0.0, %v609_v62 }
  0x88   : > { %v530_v30 = vsub.f32 0.0, %v514_v47  ;;  %v2337_v54 = vpop.eup %2336  ;;  %v761_v51 = vpack.c.bf16 %v2335_v10, %v2333_v57  ;;  %v652_v60 = vmul.f32 1.442695, %v624_v29  ;;  %v531_v52 = vsub.f32 0.0, %v515_v43 }
  0x89   : > { %2352 = vpow2.f32 %v476_v1  ;;  %v2339_v55 = vpop.eup %2338  ;;  %v654_v61 = vmul.f32 1.442695, %v625_v4  ;;  %v1719_v18 = vadd.f32 -2.0, %v2607_v7  ;;  %v706_v63 = vmul.f32 %v1718_v37, %v1718_v37 }
  0x8a   : > { %1366 = vmatmul.mubr.bf16.gmra.mrb[32].mxu1 %v488_v33  ;;  %2354 = vpow2.f32 %v478_v48  ;;  %v560_v11 = vmul.f32 1.442695, %v530_v30  ;;  %v2341_v25 = vpop.eup %2340  ;;  %1470 = vmatprep.mubr.bf16.mxu0 %v761_v51  ;;  %v489_v58 = vpack.c.bf16 %v2339_v55, %v2337_v54  ;;  %v562_v56 = vmul.f32 1.442695, %v531_v52 }
  0x8b   : > { %1373 = vmatprep.mubr.bf16.mxu1 %v569_v45  ;;  %2356 = vpow2.f32 %v652_v60  ;;  %v2343_v5 = vpop.eup %2342  ;;  %v707_v32 = vmul.f32 %v1719_v18, %v1719_v18  ;;  %v1686_v46 = vadd.f32 1.0, %v2605_v50  ;;  %v1687_v14 = vadd.f32 1.0, %v2607_v7 }
  0x8c   : > { %2358 = vpow2.f32 %v654_v61  ;;  %v2345_v15 = vpop.eup %2344  ;;  %v665_v3 = vpack.c.bf16 %v2343_v5, %v2341_v25  ;;  %v722_v53 = vsub.f32 0.0, %v706_v63  ;;  %v1702_v12 = vadd.f32 -1.0, %v2605_v50 }
  0x8d   : > { %2360 = vpow2.f32 %v560_v11  ;;  %v2347_v13 = vpop.eup %2346  ;;  %v723_v2 = vsub.f32 0.0, %v707_v32  ;;  %v434_v9 = vmul.f32 %v1686_v46, %v1686_v46  ;;  %v435_v19 = vmul.f32 %v1687_v14, %v1687_v14 }
  0x8e   : > { %2362 = vpow2.f32 %v562_v56  ;;  %1471 = vmatmul.mubr.bf16.gmra.mrb[36].mxu0 %v665_v3  ;;  %v570_v20 = vpack.c.bf16 %v2347_v13, %v2345_v15  ;;  %v752_v24 = vmul.f32 1.442695, %v722_v53  ;;  %v1703_v16 = vadd.f32 -1.0, %v2607_v7 }
  0x8f   : > { %v610_v23 = vmul.f32 %v1702_v12, %v1702_v12  ;;  %v754_v22 = vmul.f32 1.442695, %v723_v2  ;;  %v450_v17 = vsub.f32 0.0, %v434_v9  ;;  %v451_v33 = vsub.f32 0.0, %v435_v19 }
  0x90   : > { %v2349_v28 = vpop.eup %2348  ;;  %2364 = vpow2.f32 %v752_v24  ;;  %v611_v31 = vmul.f32 %v1703_v16, %v1703_v16 }
  0x91   : > { %v2351_v35 = vpop.eup %2350  ;;  %v626_v50 = vsub.f32 0.0, %v610_v23  ;;  %2366 = vpow2.f32 %v754_v22  ;;  %v480_v41 = vmul.f32 1.442695, %v450_v17  ;;  %v482_v34 = vmul.f32 1.442695, %v451_v33 }
  0x92   : > { %1374 = vmatmul.mubr.bf16.gmra.mrb[36].mxu1 %v489_v58  ;;  %v762_v36 = vpack.c.bf16 %v2351_v35, %v2349_v28  ;;  %v627_v27 = vsub.f32 0.0, %v611_v31 }
  0x93   : > { %1381 = vmatprep.mubr.bf16.mxu1 %v570_v20  ;;  %v2353_v59 = vpop.eup %2352  ;;  %v656_v6 = vmul.f32 1.442695, %v626_v50  ;;  %2368 = vpow2.f32 %v480_v41 }
  0x94   : > { %v2355_v26 = vpop.eup %2354  ;;  %1478 = vmatprep.mubr.bf16.mxu0 %v762_v36  ;;  %2370 = vpow2.f32 %v482_v34  ;;  %v658_v42 = vmul.f32 1.442695, %v627_v27 }
  0x95   : > { %v2357_v7 = vpop.eup %2356  ;;  %v490_v39 = vpack.c.bf16 %v2355_v26, %v2353_v59  ;;  %2372 = vpow2.f32 %v656_v6 }
  0x96   : > { %v2359_v0 = vpop.eup %2358  ;;  %2374 = vpow2.f32 %v658_v42 }
  0x97   : > { %v2361_v8 = vpop.eup %2360  ;;  %v666_v21 = vpack.c.bf16 %v2359_v0, %v2357_v7 }
  0x98   : > { %v2363_v45 = vpop.eup %2362 }
  0x99   : > { %1479 = vmatmul.mubr.bf16.gmra.mrb[40].mxu0 %v666_v21  ;;  %v571_v44 = vpack.c.bf16 %v2363_v45, %v2361_v8 }
  0x9a   : > { %1382 = vmatmul.mubr.bf16.gmra.mrb[40].mxu1 %v490_v39  ;;  %v2365_v40 = vpop.eup %2364 }
  0x9b   : > { %1389 = vmatprep.mubr.bf16.mxu1 %v571_v44  ;;  %v2367_v49 = vpop.eup %2366 }
  0x9c   : > { %v763_v38 = vpack.c.bf16 %v2367_v49, %v2365_v40 }
  0x9d   : > { %v2369_v62 = vpop.eup %2368 }
  0x9e   : > { %v2371_v47 = vpop.eup %2370  ;;  %1486 = vmatprep.mubr.bf16.mxu0 %v763_v38 }
  0x9f   : > { %v2373_v57 = vpop.eup %2372  ;;  %v491_v1 = vpack.c.bf16 %v2371_v47, %v2369_v62 }
  0xa0   : > { %v2375_v29 = vpop.eup %2374 }
  0xa1   : > { %v667_v43 = vpack.c.bf16 %v2375_v29, %v2373_v57 }
  0xa2   : > { %1390 = vmatmul.mubr.bf16.gmra.mrb[44].mxu1 %v491_v1 }
  0xa3   : > { %1487 = vmatmul.mubr.bf16.gmra.mrb[44].mxu0 %v667_v43 }
 0x106   : > { %v1904_v10 = vpop.f32.mrb[0].mxu0 }
 0x107   : > { %v1905_v48 = vpop.f32.mrb[1].mxu0 }
 0x108   : > { %v1928_v4 = vpop.f32.mrb[0].mxu1  ;;  %v1906_v30 = vadd.f32 %v1905_v48, %v1904_v10  ;;  %v1907_v37 = vpop.f32.mrb[2].mxu0 }
 0x109   : > { %v1929_v54 = vpop.f32.mrb[1].mxu1  ;;  %v1908_v51 = vpop.f32.mrb[3].mxu0 }
 0x10a   : > { %v2865_v60 = vadd.f32 %v1929_v54, %v1928_v4  ;;  %v1931_v52 = vpop.f32.mrb[2].mxu1  ;;  %v1909_v55 = vadd.f32 %v1908_v51, %v1907_v37 }
 0x10b   : > { %v1932_v61 = vpop.f32.mrb[3].mxu1 }
 0x10c   : > { %v2867_v11 = vadd.f32 %v1932_v61, %v1931_v52 }
 0x112   : > { %v1910_v18 = vpop.f32.mrb[4].mxu0 }
 0x113   : > { %v1911_v25 = vpop.f32.mrb[5].mxu0 }
 0x114   : > { %v2869_v58 = vadd.f32 %v1911_v25, %v1910_v18  ;;  %v1913_v56 = vpop.f32.mrb[6].mxu0 }
 0x115   : > { %v1914_v63 = vpop.f32.mrb[7].mxu0 }
 0x116   : > { %v2871_v5 = vadd.f32 %v1914_v63, %v1913_v56 }
 0x11b   : > { %v1934_v32 = vpop.f32.mrb[4].mxu1 }
 0x11c   : > { %v1935_v46 = vpop.f32.mrb[5].mxu1 }
 0x11d   : > { %v2873_v14 = vadd.f32 %v1935_v46, %v1934_v32  ;;  %v1937_v15 = vpop.f32.mrb[6].mxu1 }
 0x11e   : > { %v1938_v3 = vpop.f32.mrb[7].mxu1  ;;  %v1916_v53 = vpop.f32.mrb[8].mxu0 }
 0x11f   : > { %v2875_v12 = vadd.f32 %v1938_v3, %v1937_v15  ;;  %v1917_v13 = vpop.f32.mrb[9].mxu0 }
 0x120   : > { %v2877_v2 = vadd.f32 %v1917_v13, %v1916_v53  ;;  %v1919_v9 = vpop.f32.mrb[10].mxu0 }
 0x121   : > { %v1920_v19 = vpop.f32.mrb[11].mxu0 }
 0x122   : > { %v2879_v20 = vadd.f32 %v1920_v19, %v1919_v9 }
 0x126   : > { %v1940_v24 = vpop.f32.mrb[8].mxu1 }
 0x127   : > { %v1941_v16 = vpop.f32.mrb[9].mxu1 }
 0x128   : > { %v2881_v23 = vadd.f32 %v1941_v16, %v1940_v24  ;;  %v1943_v28 = vpop.f32.mrb[10].mxu1 }
 0x129   : > { %v1944_v22 = vpop.f32.mrb[11].mxu1 }
 0x12a   : > { %v2883_v17 = vadd.f32 %v1944_v22, %v1943_v28 }
 0x131   : > { %v1922_v33 = vpop.f32.mrb[12].mxu0 }
 0x132   : > { %v1923_v35 = vpop.f32.mrb[13].mxu0 }
 0x133   : > { %v2885_v31 = vadd.f32 %v1923_v35, %v1922_v33  ;;  %v1925_v50 = vpop.f32.mrb[14].mxu0 }
 0x134   : > { %v1926_v36 = vpop.f32.mrb[15].mxu0 }
 0x135   : > { %v1946_v41 = vpop.f32.mrb[12].mxu1  ;;  %v2887_v34 = vadd.f32 %v1926_v36, %v1925_v50 }
 0x136   : > { %v1947_v59 = vpop.f32.mrb[13].mxu1 }
 0x137   : > { %v2889_v27 = vadd.f32 %v1947_v59, %v1946_v41  ;;  %v1949_v6 = vpop.f32.mrb[14].mxu1 }
 0x138   : > { %v1950_v26 = vpop.f32.mrb[15].mxu1 }
 0x139   : > { %v2891_v7 = vadd.f32 %v1950_v26, %v1949_v6  ;;  %v2032_v39 = vpop.f32.mrb[16].mxu0 }
 0x13a   : > { %v2033_v42 = vpop.f32.mrb[17].mxu0 }
 0x13b   : > { %v2034_v0 = vadd.f32 %v2033_v42, %v2032_v39  ;;  %v2035_v8 = vpop.f32.mrb[18].mxu0 }
 0x13c   : > { %v2036_v21 = vpop.f32.mrb[19].mxu0 }
 0x13d   : > { %v1968_v45 = vpop.f32.mrb[16].mxu1  ;;  %v2037_v44 = vadd.f32 %v2036_v21, %v2035_v8 }
 0x13e   : > { %v1969_v40 = vpop.f32.mrb[17].mxu1 }
 0x13f   : > { %v1970_v49 = vadd.f32 %v1969_v40, %v1968_v45  ;;  %v1971_v38 = vpop.f32.mrb[18].mxu1 }
 0x140   : > { %v1972_v62 = vpop.f32.mrb[19].mxu1 }
 0x141   : > { %v1336_v47 = vadd.f32 %v1970_v49, %v1906_v30  ;;  %v1973_v57 = vadd.f32 %v1972_v62, %v1971_v38  ;;  %v2038_v1 = vpop.f32.mrb[20].mxu0 }
 0x142   : > { %v2039_v29 = vpop.f32.mrb[21].mxu0 }
 0x143   : > { %v1433_v43 = vadd.f32 %v2034_v0, %v1336_v47  ;;  %v1339_v10 = vadd.f32 %v1973_v57, %v1909_v55  ;;  %v2040_v48 = vadd.f32 %v2039_v29, %v2038_v1  ;;  %v2041_v4 = vpop.f32.mrb[22].mxu0 }
 0x144   : > { %v2042_v37 = vpop.f32.mrb[23].mxu0 }
 0x145   : > { %v1436_v54 = vadd.f32 %v2037_v44, %v1339_v10  ;;  %v1974_v51 = vpop.f32.mrb[20].mxu1  ;;  %v2043_v52 = vadd.f32 %v2042_v37, %v2041_v4 }
 0x146   : > { %v1975_v61 = vpop.f32.mrb[21].mxu1 }
 0x147   : > { %v1837_v30 = vpack.c.bf16 %v1436_v54, %v1433_v43  ;;  %v1976_v18 = vadd.f32 %v1975_v61, %v1974_v51  ;;  %v1977_v25 = vpop.f32.mrb[22].mxu1 }
 0x148   : > { %v1978_v56 = vpop.f32.mrb[23].mxu1 }
 0x149   : > { %1838 = vst [vmem:[%s2898_s14] sm:$0xff] %v1837_v30   ;;  %v1344_v55 = vadd.f32 %v1976_v18, %v2869_v58  ;;  %v1979_v63 = vadd.f32 %v1978_v56, %v1977_v25  ;;  %v2044_v32 = vpop.f32.mrb[24].mxu0 }
 0x14a   : > { %v2045_v46 = vpop.f32.mrb[25].mxu0 }
 0x14b   : > { %v1441_v15 = vadd.f32 %v2040_v48, %v1344_v55  ;;  %v1347_v3 = vadd.f32 %v1979_v63, %v2871_v5  ;;  %v2046_v53 = vadd.f32 %v2045_v46, %v2044_v32  ;;  %v2047_v13 = vpop.f32.mrb[26].mxu0 }
 0x14c   : > { %v2048_v9 = vpop.f32.mrb[27].mxu0 }
 0x14d   : > { %v1444_v19 = vadd.f32 %v2043_v52, %v1347_v3  ;;  %v1980_v24 = vpop.f32.mrb[24].mxu1  ;;  %v2049_v16 = vadd.f32 %v2048_v9, %v2047_v13 }
 0x14e   : > { %v1981_v28 = vpop.f32.mrb[25].mxu1 }
 0x14f   : > { %v1842_v22 = vpack.c.bf16 %v1444_v19, %v1441_v15  ;;  %v1982_v33 = vadd.f32 %v1981_v28, %v1980_v24  ;;  %v1983_v35 = vpop.f32.mrb[26].mxu1 }
 0x150   : > { %v1984_v50 = vpop.f32.mrb[27].mxu1 }
 0x151   : > { %1881 = vst [vmem:[%s2898_s14 + $0x8] sm:$0xff] %v1842_v22   ;;  %v1352_v58 = vadd.f32 %v1982_v33, %v2877_v2  ;;  %v1985_v36 = vadd.f32 %v1984_v50, %v1983_v35  ;;  %v2050_v41 = vpop.f32.mrb[28].mxu0 }
 0x152   : > { %v2051_v59 = vpop.f32.mrb[29].mxu0 }
 0x153   : > { %v1449_v6 = vadd.f32 %v2046_v53, %v1352_v58  ;;  %v1355_v5 = vadd.f32 %v1985_v36, %v2879_v20  ;;  %v2052_v26 = vadd.f32 %v2051_v59, %v2050_v41  ;;  %v2053_v39 = vpop.f32.mrb[30].mxu0 }
 0x154   : > { %v2054_v42 = vpop.f32.mrb[31].mxu0 }
 0x155   : > { %v1452_v0 = vadd.f32 %v2049_v16, %v1355_v5  ;;  %v1986_v8 = vpop.f32.mrb[28].mxu1  ;;  %v2055_v21 = vadd.f32 %v2054_v42, %v2053_v39 }
 0x156   : > { %v1987_v45 = vpop.f32.mrb[29].mxu1 }
 0x157   : > { %v1847_v44 = vpack.c.bf16 %v1452_v0, %v1449_v6  ;;  %v1988_v40 = vadd.f32 %v1987_v45, %v1986_v8  ;;  %v1989_v49 = vpop.f32.mrb[30].mxu1 }
 0x158   : > { %v1990_v38 = vpop.f32.mrb[31].mxu1 }
 0x159   : > { %1882 = vst [vmem:[%s2898_s14 + $0x10] sm:$0xff] %v1847_v44   ;;  %v1360_v2 = vadd.f32 %v1988_v40, %v2885_v31  ;;  %v1991_v62 = vadd.f32 %v1990_v38, %v1989_v49  ;;  %v2056_v47 = vpop.f32.mrb[32].mxu0 }
 0x15a   : > { %v2057_v57 = vpop.f32.mrb[33].mxu0 }
 0x15b   : > { %v1457_v1 = vadd.f32 %v2052_v26, %v1360_v2  ;;  %v1363_v20 = vadd.f32 %v1991_v62, %v2887_v34  ;;  %v2058_v29 = vadd.f32 %v2057_v57, %v2056_v47  ;;  %v2059_v43 = vpop.f32.mrb[34].mxu0 }
 0x15c   : > { %v2060_v10 = vpop.f32.mrb[35].mxu0 }
 0x15d   : > { %v1460_v48 = vadd.f32 %v2055_v21, %v1363_v20  ;;  %v1992_v4 = vpop.f32.mrb[32].mxu1  ;;  %v2061_v37 = vadd.f32 %v2060_v10, %v2059_v43 }
 0x15e   : > { %v1993_v54 = vpop.f32.mrb[33].mxu1 }
 0x15f   : > { %v1852_v51 = vpack.c.bf16 %v1460_v48, %v1457_v1  ;;  %v1994_v52 = vadd.f32 %v1993_v54, %v1992_v4  ;;  %v1995_v61 = vpop.f32.mrb[34].mxu1 }
 0x160   : > { %v1996_v30 = vpop.f32.mrb[35].mxu1 }
 0x161   : > { %1883 = vst [vmem:[%s2898_s14 + $0x18] sm:$0xff] %v1852_v51   ;;  %v1368_v31 = vadd.f32 %v1994_v52, %v2865_v60  ;;  %v1997_v18 = vadd.f32 %v1996_v30, %v1995_v61  ;;  %v2062_v34 = vpop.f32.mrb[36].mxu0 }
 0x162   : > { %v2063_v55 = vpop.f32.mrb[37].mxu0 }
 0x163   : > { %v1465_v25 = vadd.f32 %v2058_v29, %v1368_v31  ;;  %v1371_v56 = vadd.f32 %v1997_v18, %v2867_v11  ;;  %v2064_v46 = vadd.f32 %v2063_v55, %v2062_v34  ;;  %v2065_v15 = vpop.f32.mrb[38].mxu0 }
 0x164   : > { %v2066_v53 = vpop.f32.mrb[39].mxu0 }
 0x165   : > { %v1468_v63 = vadd.f32 %v2061_v37, %v1371_v56  ;;  %v1998_v32 = vpop.f32.mrb[36].mxu1  ;;  %v2067_v24 = vadd.f32 %v2066_v53, %v2065_v15 }
 0x166   : > { %v1999_v3 = vpop.f32.mrb[37].mxu1 }
 0x167   : > { %v1857_v13 = vpack.c.bf16 %v1468_v63, %v1465_v25  ;;  %v2000_v9 = vadd.f32 %v1999_v3, %v1998_v32  ;;  %v2001_v19 = vpop.f32.mrb[38].mxu1 }
 0x168   : > { %v2002_v16 = vpop.f32.mrb[39].mxu1 }
 0x169   : > { %1884 = vst [vmem:[%s2898_s14 + $0x20] sm:$0xff] %v1857_v13   ;;  %v1376_v60 = vadd.f32 %v2000_v9, %v2873_v14  ;;  %v2003_v28 = vadd.f32 %v2002_v16, %v2001_v19 }
 0x16b   : > { %v1473_v22 = vadd.f32 %v2064_v46, %v1376_v60  ;;  %v1379_v11 = vadd.f32 %v2003_v28, %v2875_v12 }
 0x16c   : > { %v2068_v50 = vpop.f32.mrb[40].mxu0 }
 0x16d   : > { %v1476_v33 = vadd.f32 %v2067_v24, %v1379_v11  ;;  %v2004_v35 = vpop.f32.mrb[40].mxu1  ;;  %v2069_v36 = vpop.f32.mrb[41].mxu0 }
 0x16e   : > { %v2005_v58 = vpop.f32.mrb[41].mxu1  ;;  %v2070_v6 = vadd.f32 %v2069_v36, %v2068_v50  ;;  %v2071_v26 = vpop.f32.mrb[42].mxu0 }
 0x16f   : > { %v1862_v41 = vpack.c.bf16 %v1476_v33, %v1473_v22  ;;  %v2006_v59 = vadd.f32 %v2005_v58, %v2004_v35  ;;  %v2007_v5 = vpop.f32.mrb[42].mxu1  ;;  %v2072_v42 = vpop.f32.mrb[43].mxu0 }
 0x170   : > { %v2008_v39 = vpop.f32.mrb[43].mxu1  ;;  %v2073_v8 = vadd.f32 %v2072_v42, %v2071_v26 }
 0x171   : > { %1885 = vst [vmem:[%s2898_s14 + $0x28] sm:$0xff] %v1862_v41   ;;  %v1384_v14 = vadd.f32 %v2006_v59, %v2881_v23  ;;  %v2009_v0 = vadd.f32 %v2008_v39, %v2007_v5 }
 0x173   : > { %v1481_v21 = vadd.f32 %v2070_v6, %v1384_v14  ;;  %v1387_v12 = vadd.f32 %v2009_v0, %v2883_v17 }
 0x175   : > { %v1484_v45 = vadd.f32 %v2073_v8, %v1387_v12  ;;  %v2010_v44 = vpop.f32.mrb[44].mxu1 }
 0x176   : > { %v2011_v49 = vpop.f32.mrb[45].mxu1  ;;  %v2074_v38 = vpop.f32.mrb[44].mxu0 }
 0x177   : > { %v1867_v40 = vpack.c.bf16 %v1484_v45, %v1481_v21  ;;  %v2012_v2 = vadd.f32 %v2011_v49, %v2010_v44  ;;  %v2013_v62 = vpop.f32.mrb[46].mxu1  ;;  %v2075_v47 = vpop.f32.mrb[45].mxu0 }
 0x178   : > { %v2014_v57 = vpop.f32.mrb[47].mxu1  ;;  %v2076_v20 = vadd.f32 %v2075_v47, %v2074_v38  ;;  %v2077_v23 = vpop.f32.mrb[46].mxu0 }
 0x179   : > { %1886 = vst [vmem:[%s2898_s14 + $0x30] sm:$0xff] %v1867_v40   ;;  %v1392_v1 = vadd.f32 %v2012_v2, %v2889_v27  ;;  %v2015_v29 = vadd.f32 %v2014_v57, %v2013_v62  ;;  %v2078_v43 = vpop.f32.mrb[47].mxu0 }
 0x17a   : > { %v2079_v48 = vadd.f32 %v2078_v43, %v2077_v23 }
 0x17b   : > { %v1489_v10 = vadd.f32 %v2076_v20, %v1392_v1  ;;  %v1395_v17 = vadd.f32 %v2015_v29, %v2891_v7 }
 0x17d   : > { %v1492_v4 = vadd.f32 %v2079_v48, %v1395_v17 }
 0x17f   : > { %v1872_v37 = vpack.c.bf16 %v1492_v4, %v1489_v10 }
 0x181   : > { %1887 = vst [vmem:[%s2898_s14 + $0x38] sm:$0xff] %v1872_v37  }
 0x182 PF: > { %s12_s9 = sadd.s32 1, %s2382_s9  }
 0x183   : > { %p9_p4 = scmp.ge.s32.totalorder %s12_s9, 6  }
 0x185   :  { %11 = sbr.rel (!%p9_p4) target bundleno = 1 (0x1), region = 58 }

</bundles_post_ra>
